<compile_context>
chip_gen: v6e
topology: v6e:2x2x1
jax: 0.10.0
libtpu: 0.0.40
codegen_flags: <defaults>
</compile_context>

<pallas_src>
import jax
import jax.numpy as jnp
from jax import lax
from jax.experimental import pallas as pl
from jax.experimental.pallas import tpu as pltpu


# ----------------------------------------------------------------------------
# In-kernel 3x3 "same" conv on a flattened (Cin, H*W) activation, as a single
# im2col matmul.
# ----------------------------------------------------------------------------
def _conv3x3_im2col(x, w_ref, b_ref, mask_ref, patch_ref, W, act):
    """x: (Cin, H*W) value; w_ref: (Cout, 9*Cin) im2col-packed weights;
    b_ref: (Cout, 1); mask_ref: (2, H*W) host-precomputed column masks
    (row 0: source col != W-1, used by dx==0 taps; row 1: source col != 0,
    used by dx==2 taps); patch_ref: (9*Cin, H*W) VMEM scratch.
    Returns (Cout, H*W) value."""
    cin, hw = x.shape

    # Pre-masked source variants (2 VPU multiplies per layer total).
    xl = x * mask_ref[0:1, :]   # feeds all dx == 0 taps
    xr = x * mask_ref[1:2, :]   # feeds all dx == 2 taps
    srcs = (xl, x, xr)

    # Build the (9*Cin, H*W) patch matrix: tap-major row blocks, each a
    # statically shifted copy of the (masked) activation; flat positions that
    # run off the top/bottom of the image are zero-filled.
    for dy in range(3):
        for dx in range(3):
            t = dy * 3 + dx
            s = (dy - 1) * W + (dx - 1)
            lo = max(0, -s)
            hi = min(hw, hw - s)
            r0 = t * cin
            if lo > 0:
                patch_ref[r0:r0 + cin, 0:lo] = jnp.zeros((cin, lo), jnp.float32)
            if hi < hw:
                patch_ref[r0:r0 + cin, hi:hw] = jnp.zeros((cin, hw - hi),
                                                          jnp.float32)
            patch_ref[r0:r0 + cin, lo:hi] = srcs[dx][:, lo + s:hi + s]

    # One MXU contraction per layer (f32 accumulate), bias added once.
    acc = jnp.dot(w_ref[...], patch_ref[...],
                  preferred_element_type=jnp.float32)
    acc = acc + b_ref[...]
    if act == "leaky_relu":
        acc = jnp.where(acc >= 0, acc, 0.2 * acc)
    else:  # tanh
        acc = jnp.tanh(acc)
    return acc


# ----------------------------------------------------------------------------
# Fused generator kernel (one grid step per batch element).
# ----------------------------------------------------------------------------
def _make_fused_kernel(layer_dims, up_before):
    n_layers = len(layer_dims)
    n_up = sum(up_before)

    def kernel(*refs):
        i = 0
        feat_ref = refs[i]; i += 1
        wrefs, brefs, mrefs = [], [], []
        for _ in range(n_layers):
            wrefs.append(refs[i]); brefs.append(refs[i + 1])
            mrefs.append(refs[i + 2]); i += 3
        urefs = []
        for _ in range(n_up):
            urefs.append(refs[i]); i += 1
        out_ref = refs[i]; i += 1
        patch_refs = refs[i:i + n_layers]

        x = feat_ref[...]                 # (nc_init, fH*fW)
        ui = 0
        for li, (cin, cout, H, W) in enumerate(layer_dims):
            del cin, cout, H
            if up_before[li]:
                # 2x nearest upsample as a matmul with a batch-shared one-hot
                # replication matrix resident in VMEM.
                x = jnp.dot(x, urefs[ui][...],
                            preferred_element_type=jnp.float32)
                ui += 1
            act = "tanh" if li == n_layers - 1 else "leaky_relu"
            x = _conv3x3_im2col(x, wrefs[li], brefs[li], mrefs[li],
                                patch_refs[li], W, act)
        out_ref[...] = x                  # single lane-dense (nc_final, H*W) store

    return kernel


def _upsample_matrix(h_in, w_in):
    """One-hot replication matrix for 2x nearest upsample, flat layout."""
    h_out, w_out = 2 * h_in, 2 * w_in
    idx = jnp.arange(h_out * w_out)
    oy = idx // w_out
    ox = idx % w_out
    src = (oy // 2) * w_in + (ox // 2)
    return jax.nn.one_hot(src, h_in * w_in, dtype=jnp.float32).T  # (HWin, HWout)


def _build_forward(layer_dims, up_before):
    layer_dims = tuple(layer_dims)
    up_before = tuple(up_before)
    kernel = _make_fused_kernel(layer_dims, up_before)

    @jax.jit
    def forward(feat, layer_consts, up_mats):
        nc_init, _, fH, fW = layer_dims[0]
        nc_final = layer_dims[-1][1]
        img_H, img_W = layer_dims[-1][2], layer_dims[-1][3]
        B = feat.shape[0]
        feat_flat = feat.reshape(B, nc_init, fH * fW)

        args = [feat_flat]
        in_specs = [pl.BlockSpec((None, nc_init, fH * fW),
                                 lambda b: (b, 0, 0))]
        for (wp, bp, mp) in layer_consts:
            args += [wp, bp, mp]
            in_specs += [pl.BlockSpec(wp.shape, lambda b: (0, 0)),
                         pl.BlockSpec(bp.shape, lambda b: (0, 0)),
                         pl.BlockSpec(mp.shape, lambda b: (0, 0))]
        for U in up_mats:
            args.append(U)
            in_specs.append(pl.BlockSpec(U.shape, lambda b: (0, 0)))

        hw_out = img_H * img_W
        out_spec = pl.BlockSpec((None, nc_final, hw_out), lambda b: (b, 0, 0))
        scratch = [pltpu.VMEM((9 * cin, h * w), jnp.float32)
                   for (cin, _, h, w) in layer_dims]

        out_flat = pl.pallas_call(
            kernel,
            out_shape=jax.ShapeDtypeStruct((B, nc_final, hw_out), jnp.float32),
            grid_spec=pltpu.PrefetchScalarGridSpec(
                num_scalar_prefetch=0,
                grid=(B,),
                in_specs=in_specs,
                out_specs=out_spec,
                scratch_shapes=scratch),
            compiler_params=pltpu.CompilerParams(
                dimension_semantics=("parallel",)),
        )(*args)
        return out_flat.reshape(B, nc_final, img_H, img_W)

    return forward


# ----------------------------------------------------------------------------
# Module wrapper
# ----------------------------------------------------------------------------
class TextureMapPredictorSPADEnoSPADENormPallas:
    """Pallas port of TextureMapPredictor_SPADE_noSPADENorm.forward."""

    def __init__(self, img_H=16, img_W=32, nc_final=3, predict_flow=False,
                 nc_init=8, ngf=16, n_upconv=2, key=jax.random.PRNGKey(0)):
        del predict_flow  # TODO(synk): flow head not realized (generator src missing)
        self.img_H, self.img_W = img_H, img_W
        self.n_upconv = n_upconv
        self.nc_final = nc_final
        self.nc_init = nc_init
        self.feat_H = img_H // 2 ** n_upconv
        self.feat_W = img_W // 2 ** n_upconv

        # (cin, cout, H, W) per conv layer; up_before[i] => 2x nearest upsample
        # applied just before conv i.
        dims = [(nc_init, ngf, self.feat_H, self.feat_W)]
        up_before = [False]
        h, w = self.feat_H, self.feat_W
        for _ in range(n_upconv):
            h, w = 2 * h, 2 * w
            dims.append((ngf, ngf, h, w))
            up_before.append(True)
        dims.append((ngf, nc_final, h, w))
        up_before.append(False)
        self.layer_dims = tuple(dims)
        self.up_before = tuple(up_before)

        # Deterministic parameter init (uniform, fan-in scaled).
        keys = jax.random.split(key, len(dims))

        def conv_params(k, cin, cout):
            k1, k2 = jax.random.split(k)
            s = 1.0 / jnp.sqrt(cin * 9.0)
            wgt = jax.random.uniform(k1, (cout, cin, 3, 3), jnp.float32, -s, s)
            bias = jax.random.uniform(k2, (cout,), jnp.float32, -s, s)
            return wgt, bias

        self.params = [conv_params(keys[i], c_in, c_out)
                       for i, (c_in, c_out, _, _) in enumerate(dims)]

        # Prepack im2col weights, (Cout,1) biases and (2,HW) column masks once.
        consts = []
        for (wgt, bias), (cin, cout, lh, lw) in zip(self.params, dims):
            # patch row t*cin + c  <->  w[o, c, dy, dx] with t = dy*3+dx
            wp = jnp.transpose(wgt, (0, 2, 3, 1)).reshape(cout, 9 * cin)
            bp = bias.reshape(cout, 1)
            col = jnp.arange(lh * lw) % lw
            m_dx0 = (col <= lw - 2).astype(jnp.float32)  # source col != W-1
            m_dx2 = (col >= 1).astype(jnp.float32)       # source col != 0
            mp = jnp.stack([m_dx0, m_dx2], axis=0)       # (2, H*W)
            consts.append((wp, bp, mp))
        self._layer_consts = tuple(consts)

        # Batch-shared 2x nearest-neighbor replication matrices (HWin, HWout).
        ups = []
        h, w = self.feat_H, self.feat_W
        for _ in range(n_upconv):
            ups.append(_upsample_matrix(h, w))
            h, w = 2 * h, 2 * w
        self.up_mats = tuple(ups)

        # Jitted fused forward (pallas_call + reshape glue).
        self._forward = _build_forward(self.layer_dims, self.up_before)

    def __call__(self, feat):
        B = feat.shape[0]
        assert feat.shape == (B, self.nc_init, self.feat_H, self.feat_W), feat.shape
        self.uvimage_pred = self._forward(feat, self._layer_consts, self.up_mats)
        return self.uvimage_pred


# ----------------------------------------------------------------------------
# Pure-JAX reference (same math) for a correctness check.
# ----------------------------------------------------------------------------
def ref_forward(model, feat):
    def conv_ref(x, wgt, bias, act):
        y = lax.conv_general_dilated(
            x, wgt, (1, 1), ((1, 1), (1, 1)),
            dimension_numbers=("NCHW", "OIHW", "NCHW"))
        y = y + bias[None, :, None, None]
        if act == "leaky_relu":
            y = jnp.where(y >= 0, y, 0.2 * y)
        elif act == "tanh":
            y = jnp.tanh(y)
        return y

    x = feat
    n_layers = len(model.params)
    for li, ((wgt, bias), up) in enumerate(zip(model.params, model.up_before)):
        if up:
            x = jnp.repeat(jnp.repeat(x, 2, axis=2), 2, axis=3)
        act = "tanh" if li == n_layers - 1 else "leaky_relu"
        x = conv_ref(x, wgt, bias, act)
    return x


if __name__ == "__main__":
    key = jax.random.PRNGKey(0)
    k_feat, k_param = jax.random.split(key)

    # Small shapes consistent with the module's forward contract.
    B, nc_init, ngf = 2, 8, 16
    img_H, img_W, n_upconv = 16, 32, 2
    feat_H, feat_W = img_H // 2 ** n_upconv, img_W // 2 ** n_upconv

    feat = jax.random.normal(k_feat, (B, nc_init, feat_H, feat_W), jnp.float32)

    model = TextureMapPredictorSPADEnoSPADENormPallas(
        img_H=img_H, img_W=img_W, nc_final=3, predict_flow=False,
        nc_init=nc_init, ngf=ngf, n_upconv=n_upconv, key=k_param)

    uv = model(feat)
    uv = jax.block_until_ready(uv)
    assert uv.shape == (B, 3, img_H, img_W), uv.shape

    ref = jax.block_until_ready(ref_forward(model, feat))
    if not jnp.allclose(uv, ref, rtol=1e-2, atol=1e-2):
        err = float(jnp.max(jnp.abs(uv - ref)))
        raise AssertionError(f"Pallas output does not match reference (max err {err})")

    print("KERNEL_OK")
</pallas_src>

<mosaic_0001>
module attributes {stable_mosaic.version = 11 : i64} {
  func.func @kernel(%arg0: i32, %arg1: memref<1x8x32xf32, #tpu.memory_space<vmem>>, %arg2: memref<16x72xf32, #tpu.memory_space<vmem>>, %arg3: memref<16x1xf32, #tpu.memory_space<vmem>>, %arg4: memref<2x32xf32, #tpu.memory_space<vmem>>, %arg5: memref<16x144xf32, #tpu.memory_space<vmem>>, %arg6: memref<16x1xf32, #tpu.memory_space<vmem>>, %arg7: memref<2x128xf32, #tpu.memory_space<vmem>>, %arg8: memref<16x144xf32, #tpu.memory_space<vmem>>, %arg9: memref<16x1xf32, #tpu.memory_space<vmem>>, %arg10: memref<2x512xf32, #tpu.memory_space<vmem>>, %arg11: memref<3x144xf32, #tpu.memory_space<vmem>>, %arg12: memref<3x1xf32, #tpu.memory_space<vmem>>, %arg13: memref<2x512xf32, #tpu.memory_space<vmem>>, %arg14: memref<32x128xf32, #tpu.memory_space<vmem>>, %arg15: memref<128x512xf32, #tpu.memory_space<vmem>>, %arg16: memref<1x3x512xf32, #tpu.memory_space<vmem>>, %arg17: memref<72x32xf32, #tpu.memory_space<vmem>>, %arg18: memref<144x128xf32, #tpu.memory_space<vmem>>, %arg19: memref<144x512xf32, #tpu.memory_space<vmem>>, %arg20: memref<144x512xf32, #tpu.memory_space<vmem>>) attributes {dimension_semantics = [#tpu.dimension_semantics<parallel>], iteration_bounds = array<i64: 2>, scalar_prefetch = 0 : i64, scratch_operands = 4 : i64, tpu.core_type = #tpu.core_type<tc>, window_params = [{transform_indices = @transform_0, window_bounds = array<i64: 1, 8, 32>}, {pipeline_mode = #tpu.pipeline_mode<synchronous>, transform_indices = @transform_1, window_bounds = array<i64: 16, 72>}, {pipeline_mode = #tpu.pipeline_mode<synchronous>, transform_indices = @transform_2, window_bounds = array<i64: 16, 1>}, {pipeline_mode = #tpu.pipeline_mode<synchronous>, transform_indices = @transform_3, window_bounds = array<i64: 2, 32>}, {pipeline_mode = #tpu.pipeline_mode<synchronous>, transform_indices = @transform_4, window_bounds = array<i64: 16, 144>}, {pipeline_mode = #tpu.pipeline_mode<synchronous>, transform_indices = @transform_5, window_bounds = array<i64: 16, 1>}, {pipeline_mode = #tpu.pipeline_mode<synchronous>, transform_indices = @transform_6, window_bounds = array<i64: 2, 128>}, {pipeline_mode = #tpu.pipeline_mode<synchronous>, transform_indices = @transform_7, window_bounds = array<i64: 16, 144>}, {pipeline_mode = #tpu.pipeline_mode<synchronous>, transform_indices = @transform_8, window_bounds = array<i64: 16, 1>}, {pipeline_mode = #tpu.pipeline_mode<synchronous>, transform_indices = @transform_9, window_bounds = array<i64: 2, 512>}, {pipeline_mode = #tpu.pipeline_mode<synchronous>, transform_indices = @transform_10, window_bounds = array<i64: 3, 144>}, {pipeline_mode = #tpu.pipeline_mode<synchronous>, transform_indices = @transform_11, window_bounds = array<i64: 3, 1>}, {pipeline_mode = #tpu.pipeline_mode<synchronous>, transform_indices = @transform_12, window_bounds = array<i64: 2, 512>}, {pipeline_mode = #tpu.pipeline_mode<synchronous>, transform_indices = @transform_13, window_bounds = array<i64: 32, 128>}, {pipeline_mode = #tpu.pipeline_mode<synchronous>, transform_indices = @transform_14, window_bounds = array<i64: 128, 512>}, {transform_indices = @transform_15, window_bounds = array<i64: 1, 3, 512>}]} {
    %c0 = arith.constant 0 : index
    %c0_0 = arith.constant 0 : index
    %c0_1 = arith.constant 0 : index
    %0 = vector.load %arg1[%c0, %c0_0, %c0_1] : memref<1x8x32xf32, #tpu.memory_space<vmem>>, vector<1x8x32xf32>
    %1 = vector.shape_cast %0 : vector<1x8x32xf32> to vector<8x32xf32>
    %c0_2 = arith.constant 0 : index
    %c0_3 = arith.constant 0 : index
    %2 = vector.load %arg4[%c0_2, %c0_3] : memref<2x32xf32, #tpu.memory_space<vmem>>, vector<1x32xf32>
    %3 = vector.broadcast %2 : vector<1x32xf32> to vector<8x32xf32>
    %4 = arith.mulf %1, %3 : vector<8x32xf32>
    %c1 = arith.constant 1 : index
    %c0_4 = arith.constant 0 : index
    %5 = vector.load %arg4[%c1, %c0_4] : memref<2x32xf32, #tpu.memory_space<vmem>>, vector<1x32xf32>
    %6 = vector.broadcast %5 : vector<1x32xf32> to vector<8x32xf32>
    %7 = arith.mulf %1, %6 : vector<8x32xf32>
    %cst = arith.constant 0.000000e+00 : f32
    %8 = vector.broadcast %cst : f32 to vector<8x9xf32>
    %c0_5 = arith.constant 0 : index
    %c0_6 = arith.constant 0 : index
    %9 = vector.load %arg17[%c0_5, %c0_6] : memref<72x32xf32, #tpu.memory_space<vmem>>, vector<8x9xf32>
    tpu.vector_store %arg17[%c0_5, %c0_6], %8 {strides = array<i32>} : memref<72x32xf32, #tpu.memory_space<vmem>>, vector<8x9xf32>,
    %10 = vector.extract_strided_slice %4 {offsets = [0, 0], sizes = [8, 23], strides = [1, 1]} : vector<8x32xf32> to vector<8x23xf32>
    %c0_7 = arith.constant 0 : index
    %c9 = arith.constant 9 : index
    %11 = vector.load %arg17[%c0_7, %c9] : memref<72x32xf32, #tpu.memory_space<vmem>>, vector<8x23xf32>
    tpu.vector_store %arg17[%c0_7, %c9], %10 {strides = array<i32>} : memref<72x32xf32, #tpu.memory_space<vmem>>, vector<8x23xf32>,
    %cst_8 = arith.constant 0.000000e+00 : f32
    %12 = vector.broadcast %cst_8 : f32 to vector<8x8xf32>
    %c8 = arith.constant 8 : index
    %c0_9 = arith.constant 0 : index
    %13 = vector.load %arg17[%c8, %c0_9] : memref<72x32xf32, #tpu.memory_space<vmem>>, vector<8x8xf32>
    tpu.vector_store %arg17[%c8, %c0_9], %12 {strides = array<i32>} : memref<72x32xf32, #tpu.memory_space<vmem>>, vector<8x8xf32>,
    %14 = vector.extract_strided_slice %1 {offsets = [0, 0], sizes = [8, 24], strides = [1, 1]} : vector<8x32xf32> to vector<8x24xf32>
    %c8_10 = arith.constant 8 : index
    %c8_11 = arith.constant 8 : index
    %15 = vector.load %arg17[%c8_10, %c8_11] : memref<72x32xf32, #tpu.memory_space<vmem>>, vector<8x24xf32>
    tpu.vector_store %arg17[%c8_10, %c8_11], %14 {strides = array<i32>} : memref<72x32xf32, #tpu.memory_space<vmem>>, vector<8x24xf32>,
    %cst_12 = arith.constant 0.000000e+00 : f32
    %16 = vector.broadcast %cst_12 : f32 to vector<8x7xf32>
    %c16 = arith.constant 16 : index
    %c0_13 = arith.constant 0 : index
    %17 = vector.load %arg17[%c16, %c0_13] : memref<72x32xf32, #tpu.memory_space<vmem>>, vector<8x7xf32>
    tpu.vector_store %arg17[%c16, %c0_13], %16 {strides = array<i32>} : memref<72x32xf32, #tpu.memory_space<vmem>>, vector<8x7xf32>,
    %18 = vector.extract_strided_slice %7 {offsets = [0, 0], sizes = [8, 25], strides = [1, 1]} : vector<8x32xf32> to vector<8x25xf32>
    %c16_14 = arith.constant 16 : index
    %c7 = arith.constant 7 : index
    %19 = vector.load %arg17[%c16_14, %c7] : memref<72x32xf32, #tpu.memory_space<vmem>>, vector<8x25xf32>
    tpu.vector_store %arg17[%c16_14, %c7], %18 {strides = array<i32>} : memref<72x32xf32, #tpu.memory_space<vmem>>, vector<8x25xf32>,
    %cst_15 = arith.constant 0.000000e+00 : f32
    %20 = vector.broadcast %cst_15 : f32 to vector<8x1xf32>
    %c24 = arith.constant 24 : index
    %c0_16 = arith.constant 0 : index
    %21 = vector.load %arg17[%c24, %c0_16] : memref<72x32xf32, #tpu.memory_space<vmem>>, vector<8x1xf32>
    tpu.vector_store %arg17[%c24, %c0_16], %20 {strides = array<i32>} : memref<72x32xf32, #tpu.memory_space<vmem>>, vector<8x1xf32>,
    %22 = vector.extract_strided_slice %4 {offsets = [0, 0], sizes = [8, 31], strides = [1, 1]} : vector<8x32xf32> to vector<8x31xf32>
    %c24_17 = arith.constant 24 : index
    %c1_18 = arith.constant 1 : index
    %23 = vector.load %arg17[%c24_17, %c1_18] : memref<72x32xf32, #tpu.memory_space<vmem>>, vector<8x31xf32>
    tpu.vector_store %arg17[%c24_17, %c1_18], %22 {strides = array<i32>} : memref<72x32xf32, #tpu.memory_space<vmem>>, vector<8x31xf32>,
    %c32 = arith.constant 32 : index
    %c0_19 = arith.constant 0 : index
    %24 = vector.load %arg17[%c32, %c0_19] : memref<72x32xf32, #tpu.memory_space<vmem>>, vector<8x32xf32>
    tpu.vector_store %arg17[%c32, %c0_19], %1 {strides = array<i32>} : memref<72x32xf32, #tpu.memory_space<vmem>>, vector<8x32xf32>,
    %cst_20 = arith.constant 0.000000e+00 : f32
    %25 = vector.broadcast %cst_20 : f32 to vector<8x1xf32>
    %c40 = arith.constant 40 : index
    %c31 = arith.constant 31 : index
    %26 = vector.load %arg17[%c40, %c31] : memref<72x32xf32, #tpu.memory_space<vmem>>, vector<8x1xf32>
    tpu.vector_store %arg17[%c40, %c31], %25 {strides = array<i32>} : memref<72x32xf32, #tpu.memory_space<vmem>>, vector<8x1xf32>,
    %27 = vector.extract_strided_slice %7 {offsets = [0, 1], sizes = [8, 31], strides = [1, 1]} : vector<8x32xf32> to vector<8x31xf32>
    %c40_21 = arith.constant 40 : index
    %c0_22 = arith.constant 0 : index
    %28 = vector.load %arg17[%c40_21, %c0_22] : memref<72x32xf32, #tpu.memory_space<vmem>>, vector<8x31xf32>
    tpu.vector_store %arg17[%c40_21, %c0_22], %27 {strides = array<i32>} : memref<72x32xf32, #tpu.memory_space<vmem>>, vector<8x31xf32>,
    %cst_23 = arith.constant 0.000000e+00 : f32
    %29 = vector.broadcast %cst_23 : f32 to vector<8x7xf32>
    %c48 = arith.constant 48 : index
    %c25 = arith.constant 25 : index
    %30 = vector.load %arg17[%c48, %c25] : memref<72x32xf32, #tpu.memory_space<vmem>>, vector<8x7xf32>
    tpu.vector_store %arg17[%c48, %c25], %29 {strides = array<i32>} : memref<72x32xf32, #tpu.memory_space<vmem>>, vector<8x7xf32>,
    %31 = vector.extract_strided_slice %4 {offsets = [0, 7], sizes = [8, 25], strides = [1, 1]} : vector<8x32xf32> to vector<8x25xf32>
    %c48_24 = arith.constant 48 : index
    %c0_25 = arith.constant 0 : index
    %32 = vector.load %arg17[%c48_24, %c0_25] : memref<72x32xf32, #tpu.memory_space<vmem>>, vector<8x25xf32>
    tpu.vector_store %arg17[%c48_24, %c0_25], %31 {strides = array<i32>} : memref<72x32xf32, #tpu.memory_space<vmem>>, vector<8x25xf32>,
    %cst_26 = arith.constant 0.000000e+00 : f32
    %33 = vector.broadcast %cst_26 : f32 to vector<8x8xf32>
    %c56 = arith.constant 56 : index
    %c24_27 = arith.constant 24 : index
    %34 = vector.load %arg17[%c56, %c24_27] : memref<72x32xf32, #tpu.memory_space<vmem>>, vector<8x8xf32>
    tpu.vector_store %arg17[%c56, %c24_27], %33 {strides = array<i32>} : memref<72x32xf32, #tpu.memory_space<vmem>>, vector<8x8xf32>,
    %35 = vector.extract_strided_slice %1 {offsets = [0, 8], sizes = [8, 24], strides = [1, 1]} : vector<8x32xf32> to vector<8x24xf32>
    %c56_28 = arith.constant 56 : index
    %c0_29 = arith.constant 0 : index
    %36 = vector.load %arg17[%c56_28, %c0_29] : memref<72x32xf32, #tpu.memory_space<vmem>>, vector<8x24xf32>
    tpu.vector_store %arg17[%c56_28, %c0_29], %35 {strides = array<i32>} : memref<72x32xf32, #tpu.memory_space<vmem>>, vector<8x24xf32>,
    %cst_30 = arith.constant 0.000000e+00 : f32
    %37 = vector.broadcast %cst_30 : f32 to vector<8x9xf32>
    %c64 = arith.constant 64 : index
    %c23 = arith.constant 23 : index
    %38 = vector.load %arg17[%c64, %c23] : memref<72x32xf32, #tpu.memory_space<vmem>>, vector<8x9xf32>
    tpu.vector_store %arg17[%c64, %c23], %37 {strides = array<i32>} : memref<72x32xf32, #tpu.memory_space<vmem>>, vector<8x9xf32>,
    %39 = vector.extract_strided_slice %7 {offsets = [0, 9], sizes = [8, 23], strides = [1, 1]} : vector<8x32xf32> to vector<8x23xf32>
    %c64_31 = arith.constant 64 : index
    %c0_32 = arith.constant 0 : index
    %40 = vector.load %arg17[%c64_31, %c0_32] : memref<72x32xf32, #tpu.memory_space<vmem>>, vector<8x23xf32>
    tpu.vector_store %arg17[%c64_31, %c0_32], %39 {strides = array<i32>} : memref<72x32xf32, #tpu.memory_space<vmem>>, vector<8x23xf32>,
    %c0_33 = arith.constant 0 : index
    %c0_34 = arith.constant 0 : index
    %41 = vector.load %arg2[%c0_33, %c0_34] : memref<16x72xf32, #tpu.memory_space<vmem>>, vector<16x72xf32>
    %c0_35 = arith.constant 0 : index
    %c0_36 = arith.constant 0 : index
    %42 = vector.load %arg17[%c0_35, %c0_36] : memref<72x32xf32, #tpu.memory_space<vmem>>, vector<72x32xf32>
    %cst_37 = arith.constant dense<0.000000e+00> : vector<16x32xf32>
    %43 = tpu.matmul %41, %42, %cst_37 {dimension_numbers = #tpu.dot_dimension_numbers<[1], [0], [0], [1], [0, 0, 1, 1], [], []>} : vector<16x72xf32>, vector<72x32xf32>, vector<16x32xf32> -> vector<16x32xf32>
    %c0_38 = arith.constant 0 : index
    %c0_39 = arith.constant 0 : index
    %44 = vector.load %arg3[%c0_38, %c0_39] : memref<16x1xf32, #tpu.memory_space<vmem>>, vector<16x1xf32>
    %45 = vector.broadcast %44 : vector<16x1xf32> to vector<16x32xf32>
    %46 = arith.addf %43, %45 : vector<16x32xf32>
    %cst_40 = arith.constant 0.000000e+00 : f32
    %47 = vector.broadcast %cst_40 : f32 to vector<16x32xf32>
    %48 = arith.cmpf oge, %46, %47 : vector<16x32xf32>
    %cst_41 = arith.constant 2.000000e-01 : f32
    %49 = vector.broadcast %cst_41 : f32 to vector<16x32xf32>
    %50 = arith.mulf %49, %46 : vector<16x32xf32>
    %51 = arith.select %48, %46, %50 : vector<16x32xi1>, vector<16x32xf32>
    %c0_42 = arith.constant 0 : index
    %c0_43 = arith.constant 0 : index
    %52 = vector.load %arg14[%c0_42, %c0_43] : memref<32x128xf32, #tpu.memory_space<vmem>>, vector<32x128xf32>
    %cst_44 = arith.constant dense<0.000000e+00> : vector<16x128xf32>
    %53 = tpu.matmul %51, %52, %cst_44 {dimension_numbers = #tpu.dot_dimension_numbers<[1], [0], [0], [1], [0, 0, 1, 1], [], []>} : vector<16x32xf32>, vector<32x128xf32>, vector<16x128xf32> -> vector<16x128xf32>
    %c0_45 = arith.constant 0 : index
    %c0_46 = arith.constant 0 : index
    %54 = vector.load %arg7[%c0_45, %c0_46] : memref<2x128xf32, #tpu.memory_space<vmem>>, vector<1x128xf32>
    %55 = vector.broadcast %54 : vector<1x128xf32> to vector<16x128xf32>
    %56 = arith.mulf %53, %55 : vector<16x128xf32>
    %c1_47 = arith.constant 1 : index
    %c0_48 = arith.constant 0 : index
    %57 = vector.load %arg7[%c1_47, %c0_48] : memref<2x128xf32, #tpu.memory_space<vmem>>, vector<1x128xf32>
    %58 = vector.broadcast %57 : vector<1x128xf32> to vector<16x128xf32>
    %59 = arith.mulf %53, %58 : vector<16x128xf32>
    %cst_49 = arith.constant 0.000000e+00 : f32
    %60 = vector.broadcast %cst_49 : f32 to vector<16x17xf32>
    %c0_50 = arith.constant 0 : index
    %c0_51 = arith.constant 0 : index
    %61 = vector.load %arg18[%c0_50, %c0_51] : memref<144x128xf32, #tpu.memory_space<vmem>>, vector<16x17xf32>
    tpu.vector_store %arg18[%c0_50, %c0_51], %60 {strides = array<i32>} : memref<144x128xf32, #tpu.memory_space<vmem>>, vector<16x17xf32>,
    %62 = vector.extract_strided_slice %56 {offsets = [0, 0], sizes = [16, 111], strides = [1, 1]} : vector<16x128xf32> to vector<16x111xf32>
    %c0_52 = arith.constant 0 : index
    %c17 = arith.constant 17 : index
    %63 = vector.load %arg18[%c0_52, %c17] : memref<144x128xf32, #tpu.memory_space<vmem>>, vector<16x111xf32>
    tpu.vector_store %arg18[%c0_52, %c17], %62 {strides = array<i32>} : memref<144x128xf32, #tpu.memory_space<vmem>>, vector<16x111xf32>,
    %cst_53 = arith.constant 0.000000e+00 : f32
    %64 = vector.broadcast %cst_53 : f32 to vector<16x16xf32>
    %c16_54 = arith.constant 16 : index
    %c0_55 = arith.constant 0 : index
    %65 = vector.load %arg18[%c16_54, %c0_55] : memref<144x128xf32, #tpu.memory_space<vmem>>, vector<16x16xf32>
    tpu.vector_store %arg18[%c16_54, %c0_55], %64 {strides = array<i32>} : memref<144x128xf32, #tpu.memory_space<vmem>>, vector<16x16xf32>,
    %66 = vector.extract_strided_slice %53 {offsets = [0, 0], sizes = [16, 112], strides = [1, 1]} : vector<16x128xf32> to vector<16x112xf32>
    %c16_56 = arith.constant 16 : index
    %c16_57 = arith.constant 16 : index
    %67 = vector.load %arg18[%c16_56, %c16_57] : memref<144x128xf32, #tpu.memory_space<vmem>>, vector<16x112xf32>
    tpu.vector_store %arg18[%c16_56, %c16_57], %66 {strides = array<i32>} : memref<144x128xf32, #tpu.memory_space<vmem>>, vector<16x112xf32>,
    %cst_58 = arith.constant 0.000000e+00 : f32
    %68 = vector.broadcast %cst_58 : f32 to vector<16x15xf32>
    %c32_59 = arith.constant 32 : index
    %c0_60 = arith.constant 0 : index
    %69 = vector.load %arg18[%c32_59, %c0_60] : memref<144x128xf32, #tpu.memory_space<vmem>>, vector<16x15xf32>
    tpu.vector_store %arg18[%c32_59, %c0_60], %68 {strides = array<i32>} : memref<144x128xf32, #tpu.memory_space<vmem>>, vector<16x15xf32>,
    %70 = vector.extract_strided_slice %59 {offsets = [0, 0], sizes = [16, 113], strides = [1, 1]} : vector<16x128xf32> to vector<16x113xf32>
    %c32_61 = arith.constant 32 : index
    %c15 = arith.constant 15 : index
    %71 = vector.load %arg18[%c32_61, %c15] : memref<144x128xf32, #tpu.memory_space<vmem>>, vector<16x113xf32>
    tpu.vector_store %arg18[%c32_61, %c15], %70 {strides = array<i32>} : memref<144x128xf32, #tpu.memory_space<vmem>>, vector<16x113xf32>,
    %cst_62 = arith.constant 0.000000e+00 : f32
    %72 = vector.broadcast %cst_62 : f32 to vector<16x1xf32>
    %c48_63 = arith.constant 48 : index
    %c0_64 = arith.constant 0 : index
    %73 = vector.load %arg18[%c48_63, %c0_64] : memref<144x128xf32, #tpu.memory_space<vmem>>, vector<16x1xf32>
    tpu.vector_store %arg18[%c48_63, %c0_64], %72 {strides = array<i32>} : memref<144x128xf32, #tpu.memory_space<vmem>>, vector<16x1xf32>,
    %74 = vector.extract_strided_slice %56 {offsets = [0, 0], sizes = [16, 127], strides = [1, 1]} : vector<16x128xf32> to vector<16x127xf32>
    %c48_65 = arith.constant 48 : index
    %c1_66 = arith.constant 1 : index
    %75 = vector.load %arg18[%c48_65, %c1_66] : memref<144x128xf32, #tpu.memory_space<vmem>>, vector<16x127xf32>
    tpu.vector_store %arg18[%c48_65, %c1_66], %74 {strides = array<i32>} : memref<144x128xf32, #tpu.memory_space<vmem>>, vector<16x127xf32>,
    %c64_67 = arith.constant 64 : index
    %c0_68 = arith.constant 0 : index
    %76 = vector.load %arg18[%c64_67, %c0_68] : memref<144x128xf32, #tpu.memory_space<vmem>>, vector<16x128xf32>
    tpu.vector_store %arg18[%c64_67, %c0_68], %53 {strides = array<i32>} : memref<144x128xf32, #tpu.memory_space<vmem>>, vector<16x128xf32>,
    %cst_69 = arith.constant 0.000000e+00 : f32
    %77 = vector.broadcast %cst_69 : f32 to vector<16x1xf32>
    %c80 = arith.constant 80 : index
    %c127 = arith.constant 127 : index
    %78 = vector.load %arg18[%c80, %c127] : memref<144x128xf32, #tpu.memory_space<vmem>>, vector<16x1xf32>
    tpu.vector_store %arg18[%c80, %c127], %77 {strides = array<i32>} : memref<144x128xf32, #tpu.memory_space<vmem>>, vector<16x1xf32>,
    %79 = vector.extract_strided_slice %59 {offsets = [0, 1], sizes = [16, 127], strides = [1, 1]} : vector<16x128xf32> to vector<16x127xf32>
    %c80_70 = arith.constant 80 : index
    %c0_71 = arith.constant 0 : index
    %80 = vector.load %arg18[%c80_70, %c0_71] : memref<144x128xf32, #tpu.memory_space<vmem>>, vector<16x127xf32>
    tpu.vector_store %arg18[%c80_70, %c0_71], %79 {strides = array<i32>} : memref<144x128xf32, #tpu.memory_space<vmem>>, vector<16x127xf32>,
    %cst_72 = arith.constant 0.000000e+00 : f32
    %81 = vector.broadcast %cst_72 : f32 to vector<16x15xf32>
    %c96 = arith.constant 96 : index
    %c113 = arith.constant 113 : index
    %82 = vector.load %arg18[%c96, %c113] : memref<144x128xf32, #tpu.memory_space<vmem>>, vector<16x15xf32>
    tpu.vector_store %arg18[%c96, %c113], %81 {strides = array<i32>} : memref<144x128xf32, #tpu.memory_space<vmem>>, vector<16x15xf32>,
    %83 = vector.extract_strided_slice %56 {offsets = [0, 15], sizes = [16, 113], strides = [1, 1]} : vector<16x128xf32> to vector<16x113xf32>
    %c96_73 = arith.constant 96 : index
    %c0_74 = arith.constant 0 : index
    %84 = vector.load %arg18[%c96_73, %c0_74] : memref<144x128xf32, #tpu.memory_space<vmem>>, vector<16x113xf32>
    tpu.vector_store %arg18[%c96_73, %c0_74], %83 {strides = array<i32>} : memref<144x128xf32, #tpu.memory_space<vmem>>, vector<16x113xf32>,
    %cst_75 = arith.constant 0.000000e+00 : f32
    %85 = vector.broadcast %cst_75 : f32 to vector<16x16xf32>
    %c112 = arith.constant 112 : index
    %c112_76 = arith.constant 112 : index
    %86 = vector.load %arg18[%c112, %c112_76] : memref<144x128xf32, #tpu.memory_space<vmem>>, vector<16x16xf32>
    tpu.vector_store %arg18[%c112, %c112_76], %85 {strides = array<i32>} : memref<144x128xf32, #tpu.memory_space<vmem>>, vector<16x16xf32>,
    %87 = vector.extract_strided_slice %53 {offsets = [0, 16], sizes = [16, 112], strides = [1, 1]} : vector<16x128xf32> to vector<16x112xf32>
    %c112_77 = arith.constant 112 : index
    %c0_78 = arith.constant 0 : index
    %88 = vector.load %arg18[%c112_77, %c0_78] : memref<144x128xf32, #tpu.memory_space<vmem>>, vector<16x112xf32>
    tpu.vector_store %arg18[%c112_77, %c0_78], %87 {strides = array<i32>} : memref<144x128xf32, #tpu.memory_space<vmem>>, vector<16x112xf32>,
    %cst_79 = arith.constant 0.000000e+00 : f32
    %89 = vector.broadcast %cst_79 : f32 to vector<16x17xf32>
    %c128 = arith.constant 128 : index
    %c111 = arith.constant 111 : index
    %90 = vector.load %arg18[%c128, %c111] : memref<144x128xf32, #tpu.memory_space<vmem>>, vector<16x17xf32>
    tpu.vector_store %arg18[%c128, %c111], %89 {strides = array<i32>} : memref<144x128xf32, #tpu.memory_space<vmem>>, vector<16x17xf32>,
    %91 = vector.extract_strided_slice %59 {offsets = [0, 17], sizes = [16, 111], strides = [1, 1]} : vector<16x128xf32> to vector<16x111xf32>
    %c128_80 = arith.constant 128 : index
    %c0_81 = arith.constant 0 : index
    %92 = vector.load %arg18[%c128_80, %c0_81] : memref<144x128xf32, #tpu.memory_space<vmem>>, vector<16x111xf32>
    tpu.vector_store %arg18[%c128_80, %c0_81], %91 {strides = array<i32>} : memref<144x128xf32, #tpu.memory_space<vmem>>, vector<16x111xf32>,
    %c0_82 = arith.constant 0 : index
    %c0_83 = arith.constant 0 : index
    %93 = vector.load %arg5[%c0_82, %c0_83] : memref<16x144xf32, #tpu.memory_space<vmem>>, vector<16x144xf32>
    %c0_84 = arith.constant 0 : index
    %c0_85 = arith.constant 0 : index
    %94 = vector.load %arg18[%c0_84, %c0_85] : memref<144x128xf32, #tpu.memory_space<vmem>>, vector<144x128xf32>
    %cst_86 = arith.constant dense<0.000000e+00> : vector<16x128xf32>
    %95 = tpu.matmul %93, %94, %cst_86 {dimension_numbers = #tpu.dot_dimension_numbers<[1], [0], [0], [1], [0, 0, 1, 1], [], []>} : vector<16x144xf32>, vector<144x128xf32>, vector<16x128xf32> -> vector<16x128xf32>
    %c0_87 = arith.constant 0 : index
    %c0_88 = arith.constant 0 : index
    %96 = vector.load %arg6[%c0_87, %c0_88] : memref<16x1xf32, #tpu.memory_space<vmem>>, vector<16x1xf32>
    %97 = vector.broadcast %96 : vector<16x1xf32> to vector<16x128xf32>
    %98 = arith.addf %95, %97 : vector<16x128xf32>
    %cst_89 = arith.constant 0.000000e+00 : f32
    %99 = vector.broadcast %cst_89 : f32 to vector<16x128xf32>
    %100 = arith.cmpf oge, %98, %99 : vector<16x128xf32>
    %cst_90 = arith.constant 2.000000e-01 : f32
    %101 = vector.broadcast %cst_90 : f32 to vector<16x128xf32>
    %102 = arith.mulf %101, %98 : vector<16x128xf32>
    %103 = arith.select %100, %98, %102 : vector<16x128xi1>, vector<16x128xf32>
    %c0_91 = arith.constant 0 : index
    %c0_92 = arith.constant 0 : index
    %104 = vector.load %arg15[%c0_91, %c0_92] : memref<128x512xf32, #tpu.memory_space<vmem>>, vector<128x512xf32>
    %cst_93 = arith.constant dense<0.000000e+00> : vector<16x512xf32>
    %105 = tpu.matmul %103, %104, %cst_93 {dimension_numbers = #tpu.dot_dimension_numbers<[1], [0], [0], [1], [0, 0, 1, 1], [], []>} : vector<16x128xf32>, vector<128x512xf32>, vector<16x512xf32> -> vector<16x512xf32>
    %c0_94 = arith.constant 0 : index
    %c0_95 = arith.constant 0 : index
    %106 = vector.load %arg10[%c0_94, %c0_95] : memref<2x512xf32, #tpu.memory_space<vmem>>, vector<1x512xf32>
    %107 = vector.broadcast %106 : vector<1x512xf32> to vector<16x512xf32>
    %108 = arith.mulf %105, %107 : vector<16x512xf32>
    %c1_96 = arith.constant 1 : index
    %c0_97 = arith.constant 0 : index
    %109 = vector.load %arg10[%c1_96, %c0_97] : memref<2x512xf32, #tpu.memory_space<vmem>>, vector<1x512xf32>
    %110 = vector.broadcast %109 : vector<1x512xf32> to vector<16x512xf32>
    %111 = arith.mulf %105, %110 : vector<16x512xf32>
    %cst_98 = arith.constant 0.000000e+00 : f32
    %112 = vector.broadcast %cst_98 : f32 to vector<16x33xf32>
    %c0_99 = arith.constant 0 : index
    %c0_100 = arith.constant 0 : index
    %113 = vector.load %arg19[%c0_99, %c0_100] : memref<144x512xf32, #tpu.memory_space<vmem>>, vector<16x33xf32>
    tpu.vector_store %arg19[%c0_99, %c0_100], %112 {strides = array<i32>} : memref<144x512xf32, #tpu.memory_space<vmem>>, vector<16x33xf32>,
    %114 = vector.extract_strided_slice %108 {offsets = [0, 0], sizes = [16, 479], strides = [1, 1]} : vector<16x512xf32> to vector<16x479xf32>
    %c0_101 = arith.constant 0 : index
    %c33 = arith.constant 33 : index
    %115 = vector.load %arg19[%c0_101, %c33] : memref<144x512xf32, #tpu.memory_space<vmem>>, vector<16x479xf32>
    tpu.vector_store %arg19[%c0_101, %c33], %114 {strides = array<i32>} : memref<144x512xf32, #tpu.memory_space<vmem>>, vector<16x479xf32>,
    %cst_102 = arith.constant 0.000000e+00 : f32
    %116 = vector.broadcast %cst_102 : f32 to vector<16x32xf32>
    %c16_103 = arith.constant 16 : index
    %c0_104 = arith.constant 0 : index
    %117 = vector.load %arg19[%c16_103, %c0_104] : memref<144x512xf32, #tpu.memory_space<vmem>>, vector<16x32xf32>
    tpu.vector_store %arg19[%c16_103, %c0_104], %116 {strides = array<i32>} : memref<144x512xf32, #tpu.memory_space<vmem>>, vector<16x32xf32>,
    %118 = vector.extract_strided_slice %105 {offsets = [0, 0], sizes = [16, 480], strides = [1, 1]} : vector<16x512xf32> to vector<16x480xf32>
    %c16_105 = arith.constant 16 : index
    %c32_106 = arith.constant 32 : index
    %119 = vector.load %arg19[%c16_105, %c32_106] : memref<144x512xf32, #tpu.memory_space<vmem>>, vector<16x480xf32>
    tpu.vector_store %arg19[%c16_105, %c32_106], %118 {strides = array<i32>} : memref<144x512xf32, #tpu.memory_space<vmem>>, vector<16x480xf32>,
    %cst_107 = arith.constant 0.000000e+00 : f32
    %120 = vector.broadcast %cst_107 : f32 to vector<16x31xf32>
    %c32_108 = arith.constant 32 : index
    %c0_109 = arith.constant 0 : index
    %121 = vector.load %arg19[%c32_108, %c0_109] : memref<144x512xf32, #tpu.memory_space<vmem>>, vector<16x31xf32>
    tpu.vector_store %arg19[%c32_108, %c0_109], %120 {strides = array<i32>} : memref<144x512xf32, #tpu.memory_space<vmem>>, vector<16x31xf32>,
    %122 = vector.extract_strided_slice %111 {offsets = [0, 0], sizes = [16, 481], strides = [1, 1]} : vector<16x512xf32> to vector<16x481xf32>
    %c32_110 = arith.constant 32 : index
    %c31_111 = arith.constant 31 : index
    %123 = vector.load %arg19[%c32_110, %c31_111] : memref<144x512xf32, #tpu.memory_space<vmem>>, vector<16x481xf32>
    tpu.vector_store %arg19[%c32_110, %c31_111], %122 {strides = array<i32>} : memref<144x512xf32, #tpu.memory_space<vmem>>, vector<16x481xf32>,
    %cst_112 = arith.constant 0.000000e+00 : f32
    %124 = vector.broadcast %cst_112 : f32 to vector<16x1xf32>
    %c48_113 = arith.constant 48 : index
    %c0_114 = arith.constant 0 : index
    %125 = vector.load %arg19[%c48_113, %c0_114] : memref<144x512xf32, #tpu.memory_space<vmem>>, vector<16x1xf32>
    tpu.vector_store %arg19[%c48_113, %c0_114], %124 {strides = array<i32>} : memref<144x512xf32, #tpu.memory_space<vmem>>, vector<16x1xf32>,
    %126 = vector.extract_strided_slice %108 {offsets = [0, 0], sizes = [16, 511], strides = [1, 1]} : vector<16x512xf32> to vector<16x511xf32>
    %c48_115 = arith.constant 48 : index
    %c1_116 = arith.constant 1 : index
    %127 = vector.load %arg19[%c48_115, %c1_116] : memref<144x512xf32, #tpu.memory_space<vmem>>, vector<16x511xf32>
    tpu.vector_store %arg19[%c48_115, %c1_116], %126 {strides = array<i32>} : memref<144x512xf32, #tpu.memory_space<vmem>>, vector<16x511xf32>,
    %c64_117 = arith.constant 64 : index
    %c0_118 = arith.constant 0 : index
    %128 = vector.load %arg19[%c64_117, %c0_118] : memref<144x512xf32, #tpu.memory_space<vmem>>, vector<16x512xf32>
    tpu.vector_store %arg19[%c64_117, %c0_118], %105 {strides = array<i32>} : memref<144x512xf32, #tpu.memory_space<vmem>>, vector<16x512xf32>,
    %cst_119 = arith.constant 0.000000e+00 : f32
    %129 = vector.broadcast %cst_119 : f32 to vector<16x1xf32>
    %c80_120 = arith.constant 80 : index
    %c511 = arith.constant 511 : index
    %130 = vector.load %arg19[%c80_120, %c511] : memref<144x512xf32, #tpu.memory_space<vmem>>, vector<16x1xf32>
    tpu.vector_store %arg19[%c80_120, %c511], %129 {strides = array<i32>} : memref<144x512xf32, #tpu.memory_space<vmem>>, vector<16x1xf32>,
    %131 = vector.extract_strided_slice %111 {offsets = [0, 1], sizes = [16, 511], strides = [1, 1]} : vector<16x512xf32> to vector<16x511xf32>
    %c80_121 = arith.constant 80 : index
    %c0_122 = arith.constant 0 : index
    %132 = vector.load %arg19[%c80_121, %c0_122] : memref<144x512xf32, #tpu.memory_space<vmem>>, vector<16x511xf32>
    tpu.vector_store %arg19[%c80_121, %c0_122], %131 {strides = array<i32>} : memref<144x512xf32, #tpu.memory_space<vmem>>, vector<16x511xf32>,
    %cst_123 = arith.constant 0.000000e+00 : f32
    %133 = vector.broadcast %cst_123 : f32 to vector<16x31xf32>
    %c96_124 = arith.constant 96 : index
    %c481 = arith.constant 481 : index
    %134 = vector.load %arg19[%c96_124, %c481] : memref<144x512xf32, #tpu.memory_space<vmem>>, vector<16x31xf32>
    tpu.vector_store %arg19[%c96_124, %c481], %133 {strides = array<i32>} : memref<144x512xf32, #tpu.memory_space<vmem>>, vector<16x31xf32>,
    %135 = vector.extract_strided_slice %108 {offsets = [0, 31], sizes = [16, 481], strides = [1, 1]} : vector<16x512xf32> to vector<16x481xf32>
    %c96_125 = arith.constant 96 : index
    %c0_126 = arith.constant 0 : index
    %136 = vector.load %arg19[%c96_125, %c0_126] : memref<144x512xf32, #tpu.memory_space<vmem>>, vector<16x481xf32>
    tpu.vector_store %arg19[%c96_125, %c0_126], %135 {strides = array<i32>} : memref<144x512xf32, #tpu.memory_space<vmem>>, vector<16x481xf32>,
    %cst_127 = arith.constant 0.000000e+00 : f32
    %137 = vector.broadcast %cst_127 : f32 to vector<16x32xf32>
    %c112_128 = arith.constant 112 : index
    %c480 = arith.constant 480 : index
    %138 = vector.load %arg19[%c112_128, %c480] : memref<144x512xf32, #tpu.memory_space<vmem>>, vector<16x32xf32>
    tpu.vector_store %arg19[%c112_128, %c480], %137 {strides = array<i32>} : memref<144x512xf32, #tpu.memory_space<vmem>>, vector<16x32xf32>,
    %139 = vector.extract_strided_slice %105 {offsets = [0, 32], sizes = [16, 480], strides = [1, 1]} : vector<16x512xf32> to vector<16x480xf32>
    %c112_129 = arith.constant 112 : index
    %c0_130 = arith.constant 0 : index
    %140 = vector.load %arg19[%c112_129, %c0_130] : memref<144x512xf32, #tpu.memory_space<vmem>>, vector<16x480xf32>
    tpu.vector_store %arg19[%c112_129, %c0_130], %139 {strides = array<i32>} : memref<144x512xf32, #tpu.memory_space<vmem>>, vector<16x480xf32>,
    %cst_131 = arith.constant 0.000000e+00 : f32
    %141 = vector.broadcast %cst_131 : f32 to vector<16x33xf32>
    %c128_132 = arith.constant 128 : index
    %c479 = arith.constant 479 : index
    %142 = vector.load %arg19[%c128_132, %c479] : memref<144x512xf32, #tpu.memory_space<vmem>>, vector<16x33xf32>
    tpu.vector_store %arg19[%c128_132, %c479], %141 {strides = array<i32>} : memref<144x512xf32, #tpu.memory_space<vmem>>, vector<16x33xf32>,
    %143 = vector.extract_strided_slice %111 {offsets = [0, 33], sizes = [16, 479], strides = [1, 1]} : vector<16x512xf32> to vector<16x479xf32>
    %c128_133 = arith.constant 128 : index
    %c0_134 = arith.constant 0 : index
    %144 = vector.load %arg19[%c128_133, %c0_134] : memref<144x512xf32, #tpu.memory_space<vmem>>, vector<16x479xf32>
    tpu.vector_store %arg19[%c128_133, %c0_134], %143 {strides = array<i32>} : memref<144x512xf32, #tpu.memory_space<vmem>>, vector<16x479xf32>,
    %c0_135 = arith.constant 0 : index
    %c0_136 = arith.constant 0 : index
    %145 = vector.load %arg8[%c0_135, %c0_136] : memref<16x144xf32, #tpu.memory_space<vmem>>, vector<16x144xf32>
    %c0_137 = arith.constant 0 : index
    %c0_138 = arith.constant 0 : index
    %146 = vector.load %arg19[%c0_137, %c0_138] : memref<144x512xf32, #tpu.memory_space<vmem>>, vector<144x512xf32>
    %cst_139 = arith.constant dense<0.000000e+00> : vector<16x512xf32>
    %147 = tpu.matmul %145, %146, %cst_139 {dimension_numbers = #tpu.dot_dimension_numbers<[1], [0], [0], [1], [0, 0, 1, 1], [], []>} : vector<16x144xf32>, vector<144x512xf32>, vector<16x512xf32> -> vector<16x512xf32>
    %c0_140 = arith.constant 0 : index
    %c0_141 = arith.constant 0 : index
    %148 = vector.load %arg9[%c0_140, %c0_141] : memref<16x1xf32, #tpu.memory_space<vmem>>, vector<16x1xf32>
    %149 = vector.broadcast %148 : vector<16x1xf32> to vector<16x512xf32>
    %150 = arith.addf %147, %149 : vector<16x512xf32>
    %cst_142 = arith.constant 0.000000e+00 : f32
    %151 = vector.broadcast %cst_142 : f32 to vector<16x512xf32>
    %152 = arith.cmpf oge, %150, %151 : vector<16x512xf32>
    %cst_143 = arith.constant 2.000000e-01 : f32
    %153 = vector.broadcast %cst_143 : f32 to vector<16x512xf32>
    %154 = arith.mulf %153, %150 : vector<16x512xf32>
    %155 = arith.select %152, %150, %154 : vector<16x512xi1>, vector<16x512xf32>
    %c0_144 = arith.constant 0 : index
    %c0_145 = arith.constant 0 : index
    %156 = vector.load %arg13[%c0_144, %c0_145] : memref<2x512xf32, #tpu.memory_space<vmem>>, vector<1x512xf32>
    %157 = vector.broadcast %156 : vector<1x512xf32> to vector<16x512xf32>
    %158 = arith.mulf %155, %157 : vector<16x512xf32>
    %c1_146 = arith.constant 1 : index
    %c0_147 = arith.constant 0 : index
    %159 = vector.load %arg13[%c1_146, %c0_147] : memref<2x512xf32, #tpu.memory_space<vmem>>, vector<1x512xf32>
    %160 = vector.broadcast %159 : vector<1x512xf32> to vector<16x512xf32>
    %161 = arith.mulf %155, %160 : vector<16x512xf32>
    %cst_148 = arith.constant 0.000000e+00 : f32
    %162 = vector.broadcast %cst_148 : f32 to vector<16x33xf32>
    %c0_149 = arith.constant 0 : index
    %c0_150 = arith.constant 0 : index
    %163 = vector.load %arg20[%c0_149, %c0_150] : memref<144x512xf32, #tpu.memory_space<vmem>>, vector<16x33xf32>
    tpu.vector_store %arg20[%c0_149, %c0_150], %162 {strides = array<i32>} : memref<144x512xf32, #tpu.memory_space<vmem>>, vector<16x33xf32>,
    %164 = vector.extract_strided_slice %158 {offsets = [0, 0], sizes = [16, 479], strides = [1, 1]} : vector<16x512xf32> to vector<16x479xf32>
    %c0_151 = arith.constant 0 : index
    %c33_152 = arith.constant 33 : index
    %165 = vector.load %arg20[%c0_151, %c33_152] : memref<144x512xf32, #tpu.memory_space<vmem>>, vector<16x479xf32>
    tpu.vector_store %arg20[%c0_151, %c33_152], %164 {strides = array<i32>} : memref<144x512xf32, #tpu.memory_space<vmem>>, vector<16x479xf32>,
    %cst_153 = arith.constant 0.000000e+00 : f32
    %166 = vector.broadcast %cst_153 : f32 to vector<16x32xf32>
    %c16_154 = arith.constant 16 : index
    %c0_155 = arith.constant 0 : index
    %167 = vector.load %arg20[%c16_154, %c0_155] : memref<144x512xf32, #tpu.memory_space<vmem>>, vector<16x32xf32>
    tpu.vector_store %arg20[%c16_154, %c0_155], %166 {strides = array<i32>} : memref<144x512xf32, #tpu.memory_space<vmem>>, vector<16x32xf32>,
    %168 = vector.extract_strided_slice %155 {offsets = [0, 0], sizes = [16, 480], strides = [1, 1]} : vector<16x512xf32> to vector<16x480xf32>
    %c16_156 = arith.constant 16 : index
    %c32_157 = arith.constant 32 : index
    %169 = vector.load %arg20[%c16_156, %c32_157] : memref<144x512xf32, #tpu.memory_space<vmem>>, vector<16x480xf32>
    tpu.vector_store %arg20[%c16_156, %c32_157], %168 {strides = array<i32>} : memref<144x512xf32, #tpu.memory_space<vmem>>, vector<16x480xf32>,
    %cst_158 = arith.constant 0.000000e+00 : f32
    %170 = vector.broadcast %cst_158 : f32 to vector<16x31xf32>
    %c32_159 = arith.constant 32 : index
    %c0_160 = arith.constant 0 : index
    %171 = vector.load %arg20[%c32_159, %c0_160] : memref<144x512xf32, #tpu.memory_space<vmem>>, vector<16x31xf32>
    tpu.vector_store %arg20[%c32_159, %c0_160], %170 {strides = array<i32>} : memref<144x512xf32, #tpu.memory_space<vmem>>, vector<16x31xf32>,
    %172 = vector.extract_strided_slice %161 {offsets = [0, 0], sizes = [16, 481], strides = [1, 1]} : vector<16x512xf32> to vector<16x481xf32>
    %c32_161 = arith.constant 32 : index
    %c31_162 = arith.constant 31 : index
    %173 = vector.load %arg20[%c32_161, %c31_162] : memref<144x512xf32, #tpu.memory_space<vmem>>, vector<16x481xf32>
    tpu.vector_store %arg20[%c32_161, %c31_162], %172 {strides = array<i32>} : memref<144x512xf32, #tpu.memory_space<vmem>>, vector<16x481xf32>,
    %cst_163 = arith.constant 0.000000e+00 : f32
    %174 = vector.broadcast %cst_163 : f32 to vector<16x1xf32>
    %c48_164 = arith.constant 48 : index
    %c0_165 = arith.constant 0 : index
    %175 = vector.load %arg20[%c48_164, %c0_165] : memref<144x512xf32, #tpu.memory_space<vmem>>, vector<16x1xf32>
    tpu.vector_store %arg20[%c48_164, %c0_165], %174 {strides = array<i32>} : memref<144x512xf32, #tpu.memory_space<vmem>>, vector<16x1xf32>,
    %176 = vector.extract_strided_slice %158 {offsets = [0, 0], sizes = [16, 511], strides = [1, 1]} : vector<16x512xf32> to vector<16x511xf32>
    %c48_166 = arith.constant 48 : index
    %c1_167 = arith.constant 1 : index
    %177 = vector.load %arg20[%c48_166, %c1_167] : memref<144x512xf32, #tpu.memory_space<vmem>>, vector<16x511xf32>
    tpu.vector_store %arg20[%c48_166, %c1_167], %176 {strides = array<i32>} : memref<144x512xf32, #tpu.memory_space<vmem>>, vector<16x511xf32>,
    %c64_168 = arith.constant 64 : index
    %c0_169 = arith.constant 0 : index
    %178 = vector.load %arg20[%c64_168, %c0_169] : memref<144x512xf32, #tpu.memory_space<vmem>>, vector<16x512xf32>
    tpu.vector_store %arg20[%c64_168, %c0_169], %155 {strides = array<i32>} : memref<144x512xf32, #tpu.memory_space<vmem>>, vector<16x512xf32>,
    %cst_170 = arith.constant 0.000000e+00 : f32
    %179 = vector.broadcast %cst_170 : f32 to vector<16x1xf32>
    %c80_171 = arith.constant 80 : index
    %c511_172 = arith.constant 511 : index
    %180 = vector.load %arg20[%c80_171, %c511_172] : memref<144x512xf32, #tpu.memory_space<vmem>>, vector<16x1xf32>
    tpu.vector_store %arg20[%c80_171, %c511_172], %179 {strides = array<i32>} : memref<144x512xf32, #tpu.memory_space<vmem>>, vector<16x1xf32>,
    %181 = vector.extract_strided_slice %161 {offsets = [0, 1], sizes = [16, 511], strides = [1, 1]} : vector<16x512xf32> to vector<16x511xf32>
    %c80_173 = arith.constant 80 : index
    %c0_174 = arith.constant 0 : index
    %182 = vector.load %arg20[%c80_173, %c0_174] : memref<144x512xf32, #tpu.memory_space<vmem>>, vector<16x511xf32>
    tpu.vector_store %arg20[%c80_173, %c0_174], %181 {strides = array<i32>} : memref<144x512xf32, #tpu.memory_space<vmem>>, vector<16x511xf32>,
    %cst_175 = arith.constant 0.000000e+00 : f32
    %183 = vector.broadcast %cst_175 : f32 to vector<16x31xf32>
    %c96_176 = arith.constant 96 : index
    %c481_177 = arith.constant 481 : index
    %184 = vector.load %arg20[%c96_176, %c481_177] : memref<144x512xf32, #tpu.memory_space<vmem>>, vector<16x31xf32>
    tpu.vector_store %arg20[%c96_176, %c481_177], %183 {strides = array<i32>} : memref<144x512xf32, #tpu.memory_space<vmem>>, vector<16x31xf32>,
    %185 = vector.extract_strided_slice %158 {offsets = [0, 31], sizes = [16, 481], strides = [1, 1]} : vector<16x512xf32> to vector<16x481xf32>
    %c96_178 = arith.constant 96 : index
    %c0_179 = arith.constant 0 : index
    %186 = vector.load %arg20[%c96_178, %c0_179] : memref<144x512xf32, #tpu.memory_space<vmem>>, vector<16x481xf32>
    tpu.vector_store %arg20[%c96_178, %c0_179], %185 {strides = array<i32>} : memref<144x512xf32, #tpu.memory_space<vmem>>, vector<16x481xf32>,
    %cst_180 = arith.constant 0.000000e+00 : f32
    %187 = vector.broadcast %cst_180 : f32 to vector<16x32xf32>
    %c112_181 = arith.constant 112 : index
    %c480_182 = arith.constant 480 : index
    %188 = vector.load %arg20[%c112_181, %c480_182] : memref<144x512xf32, #tpu.memory_space<vmem>>, vector<16x32xf32>
    tpu.vector_store %arg20[%c112_181, %c480_182], %187 {strides = array<i32>} : memref<144x512xf32, #tpu.memory_space<vmem>>, vector<16x32xf32>,
    %189 = vector.extract_strided_slice %155 {offsets = [0, 32], sizes = [16, 480], strides = [1, 1]} : vector<16x512xf32> to vector<16x480xf32>
    %c112_183 = arith.constant 112 : index
    %c0_184 = arith.constant 0 : index
    %190 = vector.load %arg20[%c112_183, %c0_184] : memref<144x512xf32, #tpu.memory_space<vmem>>, vector<16x480xf32>
    tpu.vector_store %arg20[%c112_183, %c0_184], %189 {strides = array<i32>} : memref<144x512xf32, #tpu.memory_space<vmem>>, vector<16x480xf32>,
    %cst_185 = arith.constant 0.000000e+00 : f32
    %191 = vector.broadcast %cst_185 : f32 to vector<16x33xf32>
    %c128_186 = arith.constant 128 : index
    %c479_187 = arith.constant 479 : index
    %192 = vector.load %arg20[%c128_186, %c479_187] : memref<144x512xf32, #tpu.memory_space<vmem>>, vector<16x33xf32>
    tpu.vector_store %arg20[%c128_186, %c479_187], %191 {strides = array<i32>} : memref<144x512xf32, #tpu.memory_space<vmem>>, vector<16x33xf32>,
    %193 = vector.extract_strided_slice %161 {offsets = [0, 33], sizes = [16, 479], strides = [1, 1]} : vector<16x512xf32> to vector<16x479xf32>
    %c128_188 = arith.constant 128 : index
    %c0_189 = arith.constant 0 : index
    %194 = vector.load %arg20[%c128_188, %c0_189] : memref<144x512xf32, #tpu.memory_space<vmem>>, vector<16x479xf32>
    tpu.vector_store %arg20[%c128_188, %c0_189], %193 {strides = array<i32>} : memref<144x512xf32, #tpu.memory_space<vmem>>, vector<16x479xf32>,
    %c0_190 = arith.constant 0 : index
    %c0_191 = arith.constant 0 : index
    %195 = vector.load %arg11[%c0_190, %c0_191] : memref<3x144xf32, #tpu.memory_space<vmem>>, vector<3x144xf32>
    %c0_192 = arith.constant 0 : index
    %c0_193 = arith.constant 0 : index
    %196 = vector.load %arg20[%c0_192, %c0_193] : memref<144x512xf32, #tpu.memory_space<vmem>>, vector<144x512xf32>
    %cst_194 = arith.constant dense<0.000000e+00> : vector<3x512xf32>
    %197 = tpu.matmul %195, %196, %cst_194 {dimension_numbers = #tpu.dot_dimension_numbers<[1], [0], [0], [1], [0, 0, 1, 1], [], []>} : vector<3x144xf32>, vector<144x512xf32>, vector<3x512xf32> -> vector<3x512xf32>
    %c0_195 = arith.constant 0 : index
    %c0_196 = arith.constant 0 : index
    %198 = vector.load %arg12[%c0_195, %c0_196] : memref<3x1xf32, #tpu.memory_space<vmem>>, vector<3x1xf32>
    %199 = vector.broadcast %198 : vector<3x1xf32> to vector<3x512xf32>
    %200 = arith.addf %197, %199 : vector<3x512xf32>
    %201 = math.tanh %200 : vector<3x512xf32>
    %c0_197 = arith.constant 0 : index
    %c0_198 = arith.constant 0 : index
    %c0_199 = arith.constant 0 : index
    %202 = vector.load %arg16[%c0_197, %c0_198, %c0_199] : memref<1x3x512xf32, #tpu.memory_space<vmem>>, vector<1x3x512xf32>
    %203 = vector.shape_cast %202 : vector<1x3x512xf32> to vector<3x512xf32>
    %204 = vector.shape_cast %201 : vector<3x512xf32> to vector<1x3x512xf32>
    tpu.vector_store %arg16[%c0_197, %c0_198, %c0_199], %204 {strides = array<i32>} : memref<1x3x512xf32, #tpu.memory_space<vmem>>, vector<1x3x512xf32>,
    return
  }
  func.func @transform_0(%arg0: i32) -> (i32, i32, i32) {
    %c0_i32 = arith.constant 0 : i32
    %c0_i32_0 = arith.constant 0 : i32
    %c0_i32_1 = arith.constant 0 : i32
    return %arg0, %c0_i32, %c0_i32_0 : i32, i32, i32
  }
  func.func @transform_1(%arg0: i32) -> (i32, i32) {
    %c0_i32 = arith.constant 0 : i32
    %c0_i32_0 = arith.constant 0 : i32
    %c0_i32_1 = arith.constant 0 : i32
    return %c0_i32, %c0_i32_0 : i32, i32
  }
  func.func @transform_2(%arg0: i32) -> (i32, i32) {
    %c0_i32 = arith.constant 0 : i32
    %c0_i32_0 = arith.constant 0 : i32
    %c0_i32_1 = arith.constant 0 : i32
    return %c0_i32, %c0_i32_0 : i32, i32
  }
  func.func @transform_3(%arg0: i32) -> (i32, i32) {
    %c0_i32 = arith.constant 0 : i32
    %c0_i32_0 = arith.constant 0 : i32
    %c0_i32_1 = arith.constant 0 : i32
    return %c0_i32, %c0_i32_0 : i32, i32
  }
  func.func @transform_4(%arg0: i32) -> (i32, i32) {
    %c0_i32 = arith.constant 0 : i32
    %c0_i32_0 = arith.constant 0 : i32
    %c0_i32_1 = arith.constant 0 : i32
    return %c0_i32, %c0_i32_0 : i32, i32
  }
  func.func @transform_5(%arg0: i32) -> (i32, i32) {
    %c0_i32 = arith.constant 0 : i32
    %c0_i32_0 = arith.constant 0 : i32
    %c0_i32_1 = arith.constant 0 : i32
    return %c0_i32, %c0_i32_0 : i32, i32
  }
  func.func @transform_6(%arg0: i32) -> (i32, i32) {
    %c0_i32 = arith.constant 0 : i32
    %c0_i32_0 = arith.constant 0 : i32
    %c0_i32_1 = arith.constant 0 : i32
    return %c0_i32, %c0_i32_0 : i32, i32
  }
  func.func @transform_7(%arg0: i32) -> (i32, i32) {
    %c0_i32 = arith.constant 0 : i32
    %c0_i32_0 = arith.constant 0 : i32
    %c0_i32_1 = arith.constant 0 : i32
    return %c0_i32, %c0_i32_0 : i32, i32
  }
  func.func @transform_8(%arg0: i32) -> (i32, i32) {
    %c0_i32 = arith.constant 0 : i32
    %c0_i32_0 = arith.constant 0 : i32
    %c0_i32_1 = arith.constant 0 : i32
    return %c0_i32, %c0_i32_0 : i32, i32
  }
  func.func @transform_9(%arg0: i32) -> (i32, i32) {
    %c0_i32 = arith.constant 0 : i32
    %c0_i32_0 = arith.constant 0 : i32
    %c0_i32_1 = arith.constant 0 : i32
    return %c0_i32, %c0_i32_0 : i32, i32
  }
  func.func @transform_10(%arg0: i32) -> (i32, i32) {
    %c0_i32 = arith.constant 0 : i32
    %c0_i32_0 = arith.constant 0 : i32
    %c0_i32_1 = arith.constant 0 : i32
    return %c0_i32, %c0_i32_0 : i32, i32
  }
  func.func @transform_11(%arg0: i32) -> (i32, i32) {
    %c0_i32 = arith.constant 0 : i32
    %c0_i32_0 = arith.constant 0 : i32
    %c0_i32_1 = arith.constant 0 : i32
    return %c0_i32, %c0_i32_0 : i32, i32
  }
  func.func @transform_12(%arg0: i32) -> (i32, i32) {
    %c0_i32 = arith.constant 0 : i32
    %c0_i32_0 = arith.constant 0 : i32
    %c0_i32_1 = arith.constant 0 : i32
    return %c0_i32, %c0_i32_0 : i32, i32
  }
  func.func @transform_13(%arg0: i32) -> (i32, i32) {
    %c0_i32 = arith.constant 0 : i32
    %c0_i32_0 = arith.constant 0 : i32
    %c0_i32_1 = arith.constant 0 : i32
    return %c0_i32, %c0_i32_0 : i32, i32
  }
  func.func @transform_14(%arg0: i32) -> (i32, i32) {
    %c0_i32 = arith.constant 0 : i32
    %c0_i32_0 = arith.constant 0 : i32
    %c0_i32_1 = arith.constant 0 : i32
    return %c0_i32, %c0_i32_0 : i32, i32
  }
  func.func @transform_15(%arg0: i32) -> (i32, i32, i32) {
    %c0_i32 = arith.constant 0 : i32
    %c0_i32_0 = arith.constant 0 : i32
    %c0_i32_1 = arith.constant 0 : i32
    return %arg0, %c0_i32, %c0_i32_0 : i32, i32, i32
  }
}

</mosaic_0001>

<bundles_post_ra>
// kernel: forward.1
= control target key start
LH: loop header
LB: loop body
LE: loop exit
PB: predicated region body
PF: predicated region fallthrough
CT: control target
= control target key end

     0   :  { %20 = vsyncpa [#allocation7], 0  ;;  %s2924_s18 = smov 0   ;;  %s3797_s0 = inlined_call_operand.vmem [shape: f32[2,8,32], index: 0, kind: input, shape index: {}]   ;;  %s3798_s1 = inlined_call_operand.vmem [shape: f32[16,72], index: 1, kind: input, shape index: {}]   ;;  %s3799_s2 = inlined_call_operand.vmem [shape: f32[16,1], index: 2, kind: input, shape index: {}]   ;;  %s3800_s3 = inlined_call_operand.vmem [shape: f32[2,32], index: 3, kind: input, shape index: {}]   ;;  %s3801_s4 = inlined_call_operand.vmem [shape: f32[16,144], index: 4, kind: input, shape index: {}]   ;;  %s3802_s5 = inlined_call_operand.vmem [shape: f32[16,1], index: 5, kind: input, shape index: {}]   ;;  %s3803_s6 = inlined_call_operand.vmem [shape: f32[2,128], index: 6, kind: input, shape index: {}]   ;;  %s3804_s7 = inlined_call_operand.vmem [shape: f32[16,144], index: 7, kind: input, shape index: {}]   ;;  %s3805_s8 = inlined_call_operand.vmem [shape: f32[16,1], index: 8, kind: input, shape index: {}]   ;;  %s3806_s9 = inlined_call_operand.vmem [shape: f32[2,512], index: 9, kind: input, shape index: {}]   ;;  %s3807_s10 = inlined_call_operand.vmem [shape: f32[3,144], index: 10, kind: input, shape index: {}]   ;;  %s3808_s11 = inlined_call_operand.vmem [shape: f32[3,1], index: 11, kind: input, shape index: {}]   ;;  %s3809_s12 = inlined_call_operand.vmem [shape: f32[2,512], index: 12, kind: input, shape index: {}]   ;;  %s3810_s13 = inlined_call_operand.vmem [shape: f32[32,128], index: 13, kind: input, shape index: {}]   ;;  %s3811_s14 = inlined_call_operand.hbm [shape: f32[128,512], index: 14, kind: input, shape index: {}]   ;;  %s3812_s15 = inlined_call_operand.vmem [shape: f32[2,3,512], index: 15, kind: output, shape index: {}]  }
   0x1 LB: > { %s2930_s19 = sadd.s32 4294967295, %s2817_s18   ;;  %p2649_p0 = scmp.ge.s32.totalorder %s2817_s18, 1  ;;  %s2817_s18 = sphi %s2924_s18, %s26_s18  }
   0x2   : > { %p377_p1 = scmp.lt.s32.totalorder %s2817_s18, 3  ;;  %s2819_s20 = smov [#allocation6]  }
   0x3   : > { %s428_s21 = sshll.u32 %s2819_s20, 4  ;;  %p2735_p3 = scmp.eq.s32.totalorder %s2930_s19, 0  ;;  %s429_s21 = int_to_ptr.vmem [resolvable:$true] %s428_s21 }
   0x4   : > { %p2934_p2 = pnand %p2649_p0, %p377_p1  ;;  %s2792_s23 = scalar_lea.vmem %s429_s21, 8192 }
   0x5   : > { %p2793_p7 = scmp.ne.s32.totalorder %s429_s21, %s2792_s23  ;;  %p2800_p10 = scmp.lt.s32.totalorder %s429_s21, %s429_s21 }
   0x6   : > { %p2731_p4 = pneg %p2934_p2  ;;  %p2801_p11 = scmp.lt.s32.totalorder %s2792_s23, %s2792_s23 }
   0x8   : > { %p2732_p5 = pnand %p2735_p3, %p2731_p4  ;;  %p2802_p12 = por %p2801_p11, %p2800_p10 }
   0xa   : > { %p2783_p6 = pneg %p2732_p5 }
   0xc   : > { %p2795_p8 = pnand %p2793_p7, %p2783_p6 }
   0xe   : > { %p2796_p9 = pneg %p2795_p8 }
  0x10   : > { %p2803_p13 = pnand %p2802_p12, %p2796_p9 }
  0x12   : > { %2806 = shalt.err (!%p2803_p13)
}
  0x13   : > { %s2820_s24 = smov 512   ;;  %s2821_s25 = smov 32  }
  0x14   : > { %2734 = dma.hbm_to_vmem [thread:$0]  (!%p2732_p5), %s3811_s14, 8192, %s429_s21, [#allocation7], %s2820_s24, %s2820_s24, %s2821_s25  }
  0x15   : > { %451 = sbr.rel (%p2934_p2) target bundleno = 2033 (0x7f1), region = 80 }
  0x1a   : > { %2812 = dma.done.wait (%p2735_p3), [#allocation7], 8192  }
  0x1b   : > { %2814 = vsyncadd (%p2735_p3), [#allocation7], 4294959104  ;;  %p498_p0 = scmp.lt.s32.totalorder %s2930_s19, 1  ;;  %vm551_vm0 = vcmask 261120   ;;  %vm574_vm1 = vcmask 261304   ;;  %v2822_v0 = vmov 0.0  }
  0x1c   : > { %1344 = vst.msk [vmem:[#allocation4 + $0x40] sm:$0xff] %vm551_vm0, %v2822_v0  ;;  %1345 = vst.msk [vmem:[#allocation4 + $0x60] sm:$0xff] %vm551_vm0, %v2822_v0  ;;  %vm567_vm2 = vcmask 261312   ;;  %934 = vmatprep.subr.mxu1 %v2822_v0  ;;  %vm560_vm3 = vcmask 261320   ;;  %vm553_vm4 = vcmask 261368   ;;  %vm558_vm5 = vcmask 252928  }
  0x1d   : > { %2037 = vst.msk [vmem:[#allocation5 + $0x40] sm:$0xff] %vm551_vm0, %v2822_v0  ;;  %2038 = vst.msk [vmem:[#allocation5 + $0x60] sm:$0xff] %vm551_vm0, %v2822_v0  ;;  %s3824_s19 = smov (!%p498_p0, %s2930_s19), 1  ;;  %vm544_vm6 = vcmask 7168   ;;  %v2658_v2 = vld [vmem:[%s3800_s3 + $0x1] ss:$0 sm:$0xff] }
  0x1e   : > { %575 = vst.msk [vmem:[#allocation2 + $0x40] sm:$0xff] %vm574_vm1, %v2822_v0  ;;  %s2654_s28 = sshll.u32 %s3824_s19, 3  ;;  %v2657_v3 = vld [vmem:[%s3800_s3] ss:$0 sm:$0xff]  ;;  %vm536_vm7 = vcmask 56320   ;;  %s2823_s23 = smov 119  }
  0x1f   : > { %568 = vst.msk [vmem:[#allocation2 + $0x38] sm:$0xff] %vm567_vm2, %v2822_v0  ;;  %s501_s16 = scalar_lea.vmem %s3797_s0, %s2654_s28  ;;  %s2824_s24 = smov 121   ;;  %vm528_vm8 = vcmask 64512   ;;  %vm520_vm9 = vcmask 72704   ;;  %v581_v6 = vld [vmem:[%s3798_s1] sm:$0xff]  ;;  %vm604_vm10 = vcmask 588800  }
  0x20   : > { %561 = vst.msk [vmem:[#allocation2 + $0x30] sm:$0xff] %vm560_vm3, %v2822_v0  ;;  %v507_v1 = vld [vmem:[%s501_s16] sm:$0xff]  ;;  %s2825_s25 = smov 120   ;;  %s2826_s26 = smov 127   ;;  %2713 = vmatprep.mubr.msk.f32.mxu0 %vm604_vm10, %v581_v6  ;;  %v593_v7 = vld [vmem:[%s3799_s2 + $0x8] sm:$0xff]  ;;  %v2831_v9 = vmov 0  }
  0x21   : > { %554 = vst.msk [vmem:[#allocation2 + $0x28] sm:$0xff] %vm553_vm4, %v2822_v0  ;;  %v519_v4 = vmul.f32 %v2658_v2, %v507_v1  ;;  %v513_v5 = vmul.f32 %v2657_v3, %v507_v1  ;;  %s2827_s27 = smov 1   ;;  %s2828_s28 = smov 7   ;;  %v592_v8 = vld [vmem:[%s3799_s2] sm:$0xff]  ;;  %2771 = vset.pattern.permute.xlu1 %v2831_v9  ;;  %2770 = vset.pattern.permute.xlu0 %v2831_v9  ;;  %vm579_vm11 = vcmask 187392   ;;  %vm565_vm12 = vcmask 203776  }
  0x22   : > { %1393 = vst.msk [vmem:[#allocation4 + $0x80] sm:$0xff] %vm558_vm5, %v2822_v0  ;;  %1394 = vst.msk [vmem:[#allocation4 + $0xa0] sm:$0xff] %vm558_vm5, %v2822_v0  ;;  %s2829_s29 = smov 8   ;;  %s2830_s30 = smov 9   ;;  %vm572_vm13 = vcmask 195584   ;;  %vm549_vm14 = vcmask 261128  }
  0x23   : > { %2085 = vst.msk [vmem:[#allocation5 + $0x80] sm:$0xff] %vm558_vm5, %v2822_v0  ;;  %2086 = vst.msk [vmem:[#allocation5 + $0xa0] sm:$0xff] %vm558_vm5, %v2822_v0  ;;  %576 = vrot.lane.b32.xlu0 %v519_v4, %s2823_s23  ;;  %562 = vrot.lane.b32.xlu1 %v513_v5, %s2824_s24  ;;  %vm542_vm15 = vcmask 261176   ;;  %vm534_vm1 = vcmask 261184   ;;  %vm526_vm2 = vcmask 261192   ;;  %v582_v27 = vld [vmem:[%s3798_s1 + $0x8] sm:$0xff] }
  0x24   : > { %545 = vst.msk [vmem:[#allocation2 + $0x18] sm:$0xff] %vm544_vm6, %v2822_v0  ;;  %833 = vst.msk [vmem:[#allocation3 + $0x30] sm:$0xff] %vm544_vm6, %v2822_v0  ;;  %v695_v28 = vld [vmem:[%s3810_s13 + $0x18] sm:$0xff]  ;;  %v694_v29 = vld [vmem:[%s3810_s13 + $0x10] sm:$0xff]  ;;  %s2834_s16 = smov 15   ;;  %s2835_s17 = smov 16  }
  0x25   : > { %834 = vst.msk [vmem:[#allocation3 + $0x38] sm:$0xff] %vm544_vm6, %v2822_v0  ;;  %1442 = vst.msk [vmem:[#allocation4 + $0xc0] sm:$0xff] %vm544_vm6, %v2822_v0  ;;  %v693_v30 = vld [vmem:[%s3810_s13 + $0x8] sm:$0xff]  ;;  %v692_v31 = vld [vmem:[%s3810_s13] sm:$0xff]  ;;  %s2836_s20 = smov 17   ;;  %s2837_s21 = smov 111  }
  0x26   : > { %1443 = vst.msk [vmem:[#allocation4 + $0xe0] sm:$0xff] %vm544_vm6, %v2822_v0  ;;  %2133 = vst.msk [vmem:[#allocation5 + $0xc0] sm:$0xff] %vm544_vm6, %v2822_v0  ;;  %v2663_v43 = vld [vmem:[%s3803_s6] ss:$0 sm:$0xff]  ;;  %v2664_v46 = vld [vmem:[%s3803_s6 + $0x1] ss:$0 sm:$0xff] }
  0x27   : > { %2134 = vst.msk [vmem:[#allocation5 + $0xe0] sm:$0xff] %vm544_vm6, %v2822_v0  ;;  %569 = vrot.lane.b32.xlu0 %v507_v1, %s2825_s25  ;;  %555 = vrot.lane.b32.xlu1 %v519_v4, %s2826_s26  ;;  %s2832_s25 = smov 112   ;;  %v895_v50 = vld [vmem:[%s3801_s4 + $0x8] sm:$0xff]  ;;  %v916_v51 = vld [vmem:[%s3802_s5] sm:$0xff]  ;;  %v1075_v54 = vld [vmem:[#allocation6 + $0x1e0] sm:$0xff]  ;;  %s2838_s23 = smov 96  }
  0x28   : > { %552 = vst.msk [vmem:[#allocation2 + $0x20] sm:$0xff] %vm551_vm0, %v507_v1  ;;  %v917_v52 = vld [vmem:[%s3802_s5 + $0x8] sm:$0xff]  ;;  %v1076_v53 = vld [vmem:[#allocation6 + $0x1e8] sm:$0xff]  ;;  %v1071_v56 = vld [vmem:[#allocation6 + $0x1c0] sm:$0xff] }
  0x29   : > { %537 = vst.msk [vmem:[#allocation2 + $0x10] sm:$0xff] %vm536_vm7, %v2822_v0  ;;  %vm870_vm7 = vcmask 1048448   ;;  %v1072_v55 = vld [vmem:[#allocation6 + $0x1c8] sm:$0xff]  ;;  %v1067_v58 = vld [vmem:[#allocation6 + $0x1a0] sm:$0xff] }
  0x2a   : > { %529 = vst.msk [vmem:[#allocation2 + $0x8] sm:$0xff] %vm528_vm8, %v2822_v0  ;;  %vm858_vm8 = vcmask 1048456   ;;  %v1068_v57 = vld [vmem:[#allocation6 + $0x1a8] sm:$0xff]  ;;  %v1063_v60 = vld [vmem:[#allocation6 + $0x180] sm:$0xff] }
  0x2b   : > { %521 = vst.msk [vmem:[#allocation2] sm:$0xff] %vm520_vm9, %v2822_v0  ;;  %546 = vrot.lane.b32.xlu0 %v513_v5, %s2827_s27  ;;  %539 = vrot.lane.b32.xlu1 %v519_v4, %s2828_s28  ;;  %vm846_vm9 = vcmask 1048568   ;;  %v1064_v59 = vld [vmem:[#allocation6 + $0x188] sm:$0xff]  ;;  %v1059_v62 = vld [vmem:[#allocation6 + $0x160] sm:$0xff]  ;;  %s2839_s28 = smov 32  }
  0x2c   : > { %872 = vst.msk [vmem:[#allocation3 + $0x78] sm:$0xff] %vm870_vm7, %v2822_v0  ;;  %871 = vst.msk [vmem:[#allocation3 + $0x70] sm:$0xff] %vm870_vm7, %v2822_v0  ;;  %v1060_v61 = vld [vmem:[#allocation6 + $0x168] sm:$0xff]  ;;  %v1051_v3 = vld [vmem:[#allocation6 + $0x120] sm:$0xff]  ;;  %vm802_vm7 = vcmask 1047688  }
  0x2d   : > { %860 = vst.msk [vmem:[#allocation3 + $0x68] sm:$0xff] %vm858_vm8, %v2822_v0  ;;  %859 = vst.msk [vmem:[#allocation3 + $0x60] sm:$0xff] %vm858_vm8, %v2822_v0  ;;  %v1056_v63 = vld [vmem:[#allocation6 + $0x148] sm:$0xff]  ;;  %v1039_v9 = vld [vmem:[#allocation6 + $0xc0] sm:$0xff]  ;;  %vm891_vm8 = vcmask 908288  }
  0x2e   : > { %848 = vst.msk [vmem:[#allocation3 + $0x58] sm:$0xff] %vm846_vm9, %v2822_v0  ;;  %847 = vst.msk [vmem:[#allocation3 + $0x50] sm:$0xff] %vm846_vm9, %v2822_v0  ;;  %v1052_v2 = vld [vmem:[#allocation6 + $0x128] sm:$0xff] }
  0x2f   : > { %531 = vrot.lane.b32.xlu0 %v507_v1, %s2829_s29  ;;  %523 = vrot.lane.b32.xlu1 %v513_v5, %s2830_s30  ;;  %v587_v22 = vld [vmem:[#allocation2 + $0x20] sm:$0xff]  ;;  %1490 = vst.msk [vmem:[#allocation4 + $0x158] sm:$0xff] %vm846_vm9, %v2822_v0  ;;  %1491 = vst.msk [vmem:[#allocation4 + $0x178] sm:$0xff] %vm846_vm9, %v2822_v0  ;;  %s2833_s30 = smov 113   ;;  %v1055_v1 = vld [vmem:[#allocation6 + $0x140] sm:$0xff] }
  0x30   : > { %2181 = vst.msk [vmem:[#allocation5 + $0x158] sm:$0xff] %vm846_vm9, %v2822_v0  ;;  %2182 = vst.msk [vmem:[#allocation5 + $0x178] sm:$0xff] %vm846_vm9, %v2822_v0  ;;  %v1048_v4 = vld [vmem:[#allocation6 + $0x108] sm:$0xff]  ;;  %v1047_v5 = vld [vmem:[#allocation6 + $0x100] sm:$0xff] }
  0x31   : > { %v1044_v6 = vld [vmem:[#allocation6 + $0xe8] sm:$0xff] }
  0x33   : > { %601 = vperm.xlu1 %2771, %v593_v7   ;;  %596 = vperm.xlu0 %2770, %v592_v8   ;;  %v1043_v7 = vld [vmem:[#allocation6 + $0xe0] sm:$0xff]  ;;  %v1040_v8 = vld [vmem:[#allocation6 + $0xc8] sm:$0xff] }
  0x95   : > { %v577_v10 = vpop.permute.xlu0 %576  ;;  %v563_v11 = vpop.permute.xlu1 %562 }
  0x96   : > { %580 = vst.msk [vmem:[#allocation2 + $0x40] sm:$0xff] %vm579_vm11, %v577_v10  ;;  %vm805_vm11 = vcmask 130048   ;;  %v1036_v10 = vld [vmem:[#allocation6 + $0xa8] sm:$0xff] }
  0x97   : > { %566 = vst.msk [vmem:[#allocation2 + $0x30] sm:$0xff] %vm565_vm12, %v563_v11  ;;  %vm791_vm12 = vcmask 138240   ;;  %2665 = vmatprep.mubr.msk.f32.mxu1 %vm805_vm11, %v895_v50  ;;  %v1035_v11 = vld [vmem:[#allocation6 + $0xa0] sm:$0xff] }
  0x98   : > { %807 = vst.msk [vmem:[#allocation3 + $0x18] sm:$0xff] %vm805_vm11, %v2822_v0  ;;  %806 = vst.msk [vmem:[#allocation3 + $0x10] sm:$0xff] %vm805_vm11, %v2822_v0  ;;  %v897_v50 = vld [vmem:[%s3801_s4 + $0x18] sm:$0xff] }
  0x99   : > { %v570_v12 = vpop.permute.xlu0 %569  ;;  %v556_v13 = vpop.permute.xlu1 %555  ;;  %793 = vst.msk [vmem:[#allocation3 + $0x8] sm:$0xff] %vm791_vm12, %v2822_v0  ;;  %792 = vst.msk [vmem:[#allocation3] sm:$0xff] %vm791_vm12, %v2822_v0  ;;  %vm1572_vm12 = vcmask 1048320  }
  0x9a   : > { %573 = vst.msk [vmem:[#allocation2 + $0x38] sm:$0xff] %vm572_vm13, %v570_v12  ;;  %vm882_vm13 = vcmask 1048440   ;;  %v1032_v12 = vld [vmem:[#allocation6 + $0x88] sm:$0xff] }
  0x9b   : > { %559 = vst.msk [vmem:[#allocation2 + $0x28] sm:$0xff] %vm558_vm5, %v556_v13  ;;  %v1031_v13 = vld [vmem:[#allocation6 + $0x80] sm:$0xff] }
  0x9c   : > { %884 = vst.msk [vmem:[#allocation3 + $0x88] sm:$0xff] %vm882_vm13, %v2822_v0  ;;  %883 = vst.msk [vmem:[#allocation3 + $0x80] sm:$0xff] %vm882_vm13, %v2822_v0  ;;  %vm1530_vm13 = vcmask 1048328  }
  0x9d   : > { %v591_v14 = vld [vmem:[#allocation2 + $0x40] sm:$0xff]  ;;  %v547_v15 = vpop.permute.xlu0 %546  ;;  %v540_v16 = vpop.permute.xlu1 %539  ;;  %1573 = vst.msk [vmem:[#allocation4 + $0x1d8] sm:$0xff] %vm1572_vm12, %v2822_v0  ;;  %1574 = vst.msk [vmem:[#allocation4 + $0x1f8] sm:$0xff] %vm1572_vm12, %v2822_v0 }
  0x9e   : > { %2695 = vmatprep.subr.mxu0 %v591_v14  ;;  %550 = vst.msk [vmem:[#allocation2 + $0x18] sm:$0xff] %vm549_vm14, %v547_v15  ;;  %v589_v20 = vld [vmem:[#allocation2 + $0x30] sm:$0xff]  ;;  %v1027_v15 = vld [vmem:[#allocation6 + $0x60] sm:$0xff]  ;;  %vm879_vm14 = vcmask 916480  }
  0x9f   : > { %543 = vst.msk [vmem:[#allocation2 + $0x10] sm:$0xff] %vm542_vm15, %v540_v16  ;;  %2696 = vmatpush3.msra.mxu0 %v591_v14  ;;  %v1028_v14 = vld [vmem:[#allocation6 + $0x68] sm:$0xff]  ;;  %vm867_vm15 = vcmask 924672  }
  0xa0   : > { %2261 = vst.msk [vmem:[#allocation5 + $0x1d8] sm:$0xff] %vm1572_vm12, %v2822_v0  ;;  %2262 = vst.msk [vmem:[#allocation5 + $0x1f8] sm:$0xff] %vm1572_vm12, %v2822_v0 }
  0xa1   : > { %v590_v17 = vld [vmem:[#allocation2 + $0x38] sm:$0xff]  ;;  %v532_v18 = vpop.permute.xlu0 %531  ;;  %v524_v19 = vpop.permute.xlu1 %523  ;;  %1531 = vst.msk [vmem:[#allocation4 + $0x198] sm:$0xff] %vm1530_vm13, %v2822_v0  ;;  %1532 = vst.msk [vmem:[#allocation4 + $0x1b8] sm:$0xff] %vm1530_vm13, %v2822_v0 }
  0xa2   : > { %2697 = vmatprep.subr.mxu0 %v590_v17  ;;  %535 = vst.msk [vmem:[#allocation2 + $0x8] sm:$0xff] %vm534_vm1, %v532_v18  ;;  %v588_v21 = vld [vmem:[#allocation2 + $0x28] sm:$0xff]  ;;  %vm855_vm1 = vcmask 1039360  }
  0xa3   : > { %527 = vst.msk [vmem:[#allocation2] sm:$0xff] %vm526_vm2, %v524_v19  ;;  %2698 = vmatpush3.msra.mxu0 %v590_v17  ;;  %vm841_vm2 = vcmask 1047560  }
  0xa4   : > { %2699 = vmatprep.subr.mxu0 %v589_v20  ;;  %2221 = vst.msk [vmem:[#allocation5 + $0x198] sm:$0xff] %vm1530_vm13, %v2822_v0  ;;  %2222 = vst.msk [vmem:[#allocation5 + $0x1b8] sm:$0xff] %vm1530_vm13, %v2822_v0 }
  0xa5   : > { %2700 = vmatpush3.msra.mxu0 %v589_v20  ;;  %v586_v23 = vld [vmem:[#allocation2 + $0x18] sm:$0xff] }
  0xa6   : > { %2701 = vmatprep.subr.mxu0 %v588_v21  ;;  %v585_v24 = vld [vmem:[#allocation2 + $0x10] sm:$0xff] }
  0xa7   : > { %2702 = vmatpush3.msra.mxu0 %v588_v21 }
  0xa8   : > { %2703 = vmatprep.subr.mxu0 %v587_v22 }
  0xa9   : > { %2704 = vmatpush3.msra.mxu0 %v587_v22  ;;  %v584_v25 = vld [vmem:[#allocation2 + $0x8] sm:$0xff] }
  0xaa   : > { %2705 = vmatprep.subr.mxu0 %v586_v23  ;;  %v583_v26 = vld [vmem:[#allocation2] sm:$0xff] }
  0xab   : > { %2706 = vmatpush3.msra.mxu0 %v586_v23 }
  0xac   : > { %2707 = vmatprep.subr.mxu0 %v585_v24 }
  0xad   : > { %2708 = vmatpush3.msra.mxu0 %v585_v24 }
  0xae   : > { %2709 = vmatprep.subr.mxu0 %v584_v25  ;;  %v602_v32 = vpop.permute.xlu1 %601  ;;  %v597_v34 = vpop.permute.xlu0 %596 }
  0xaf   : > { %2710 = vmatpush3.msra.mxu0 %v584_v25 }
  0xb0   : > { %2711 = vmatprep.subr.mxu0 %v583_v26 }
  0xb1   : > { %2712 = vmatpush3.msra.mxu0 %v583_v26 }
  0xb2   : > { %2714 = vmatmul.mubr.msk.f32.vlgmr.msra.gmra.mxu0 %vm604_vm10, %v582_v27  ;;  %2716 = vmatprep.subr.mxu0 %v695_v28  ;;  %vm819_vm10 = vcmask 121856  }
  0xb3   : > { %2717 = vmatpush3.msra.mxu0 %v695_v28  ;;  %821 = vst.msk [vmem:[#allocation3 + $0x28] sm:$0xff] %vm819_vm10, %v2822_v0  ;;  %820 = vst.msk [vmem:[#allocation3 + $0x20] sm:$0xff] %vm819_vm10, %v2822_v0 }
  0xb4   : > { %2718 = vmatprep.subr.mxu0 %v694_v29 }
  0xb5   : > { %2719 = vmatpush3.msra.mxu0 %v694_v29 }
  0xb6   : > { %2720 = vmatprep.subr.mxu0 %v693_v30 }
  0xb7   : > { %2721 = vmatpush3.msra.mxu0 %v693_v30 }
  0xb8   : > { %2722 = vmatprep.subr.mxu0 %v692_v31 }
  0xb9   : > { %2723 = vmatpush3.msra.mxu0 %v692_v31 }
  0xba   : > { %1079 = vmatprep.subr.mxu0 %v1076_v53  ;;  %v1073_v53 = vld [vmem:[#allocation6 + $0x1d0] sm:$0xff] }
 0x172   : > { %v2715_v33 = vpop.f32.mrf.mxu0 }
 0x173   : > { %v683_v35 = vadd.f32 %v2715_v33, %v602_v32 }
 0x174   : > { %v677_v36 = vpop.f32.mrf.mxu0 }
 0x175   : > { %v678_v37 = vadd.f32 %v677_v36, %v597_v34  ;;  %v689_v38 = vmul.f32 0.2, %v683_v35  ;;  %vm687_vm3 = vcmp.ge.f32.partialorder %v683_v35, 0.0 }
 0x177   : > { %vm686_vm4 = vcmp.ge.f32.partialorder %v678_v37, 0.0  ;;  %v688_v39 = vmul.f32 0.2, %v678_v37  ;;  %v691_v41 = vsel %vm687_vm3, %v683_v35, %v689_v38  ;;  %vm830_vm3 = vcmask 1047672  }
 0x179   : > { %v690_v40 = vsel %vm686_vm4, %v678_v37, %v688_v39  ;;  %vm816_vm4 = vcmask 1047680  }
 0x17a   : > { %2724 = vmatprep.mubr.msk.f32.mxu0 %vm551_vm0, %v690_v40 }
 0x17b   : > { %2725 = vmatmul.mubr.msk.f32.vlgmr.msra.gmra.mxu0 %vm551_vm0, %v691_v41 }
 0x17c   : > { %1143 = vmatprep.mubr.f32.mxu0 %v2822_v0  ;;  %1080 = vmatpush1.msra.mxu0 %v1075_v54  ;;  %v896_v54 = vld [vmem:[%s3801_s4 + $0x10] sm:$0xff] }
 0x17d   : > { %1081 = vmatprep.subr.mxu0 %v1072_v55  ;;  %v1070_v55 = vld [vmem:[#allocation6 + $0x1b8] sm:$0xff] }
 0x17e   : > { %1082 = vmatpush1.msra.mxu0 %v1071_v56  ;;  %v1069_v56 = vld [vmem:[#allocation6 + $0x1b0] sm:$0xff] }
 0x17f   : > { %1083 = vmatprep.subr.mxu0 %v1068_v57  ;;  %v1066_v57 = vld [vmem:[#allocation6 + $0x198] sm:$0xff] }
 0x180   : > { %1084 = vmatpush1.msra.mxu0 %v1067_v58  ;;  %v1065_v58 = vld [vmem:[#allocation6 + $0x190] sm:$0xff] }
 0x181   : > { %1085 = vmatprep.subr.mxu0 %v1064_v59  ;;  %v1062_v59 = vld [vmem:[#allocation6 + $0x178] sm:$0xff] }
 0x182   : > { %1086 = vmatpush1.msra.mxu0 %v1063_v60  ;;  %v1061_v60 = vld [vmem:[#allocation6 + $0x170] sm:$0xff] }
 0x183   : > { %1087 = vmatprep.subr.mxu0 %v1060_v61  ;;  %v1058_v61 = vld [vmem:[#allocation6 + $0x158] sm:$0xff] }
 0x184   : > { %1088 = vmatpush1.msra.mxu0 %v1059_v62  ;;  %v1057_v62 = vld [vmem:[#allocation6 + $0x150] sm:$0xff] }
 0x185   : > { %1089 = vmatprep.subr.mxu0 %v1056_v63  ;;  %v1054_v63 = vld [vmem:[#allocation6 + $0x138] sm:$0xff] }
 0x186   : > { %1090 = vmatpush1.msra.mxu0 %v1055_v1  ;;  %v1053_v1 = vld [vmem:[#allocation6 + $0x130] sm:$0xff] }
 0x187   : > { %1091 = vmatprep.subr.mxu0 %v1052_v2  ;;  %v1050_v2 = vld [vmem:[#allocation6 + $0x118] sm:$0xff] }
 0x188   : > { %1092 = vmatpush1.msra.mxu0 %v1051_v3  ;;  %v1049_v3 = vld [vmem:[#allocation6 + $0x110] sm:$0xff] }
 0x189   : > { %1093 = vmatprep.subr.mxu0 %v1048_v4  ;;  %v1046_v4 = vld [vmem:[#allocation6 + $0xf8] sm:$0xff] }
 0x18a   : > { %1094 = vmatpush1.msra.mxu0 %v1047_v5  ;;  %v1045_v5 = vld [vmem:[#allocation6 + $0xf0] sm:$0xff] }
 0x18b   : > { %1095 = vmatprep.subr.mxu0 %v1044_v6  ;;  %v1042_v6 = vld [vmem:[#allocation6 + $0xd8] sm:$0xff] }
 0x18c   : > { %1096 = vmatpush1.msra.mxu0 %v1043_v7  ;;  %v1041_v7 = vld [vmem:[#allocation6 + $0xd0] sm:$0xff] }
 0x18d   : > { %1097 = vmatprep.subr.mxu0 %v1040_v8  ;;  %v1038_v8 = vld [vmem:[#allocation6 + $0xb8] sm:$0xff] }
 0x18e   : > { %1098 = vmatpush1.msra.mxu0 %v1039_v9  ;;  %v1037_v9 = vld [vmem:[#allocation6 + $0xb0] sm:$0xff] }
 0x18f   : > { %1099 = vmatprep.subr.mxu0 %v1036_v10  ;;  %v1034_v10 = vld [vmem:[#allocation6 + $0x98] sm:$0xff] }
 0x190   : > { %1100 = vmatpush1.msra.mxu0 %v1035_v11  ;;  %v1033_v11 = vld [vmem:[#allocation6 + $0x90] sm:$0xff] }
 0x191   : > { %1101 = vmatprep.subr.mxu0 %v1032_v12  ;;  %v1030_v12 = vld [vmem:[#allocation6 + $0x78] sm:$0xff] }
 0x192   : > { %1102 = vmatpush1.msra.mxu0 %v1031_v13  ;;  %v1029_v13 = vld [vmem:[#allocation6 + $0x70] sm:$0xff] }
 0x193   : > { %1103 = vmatprep.subr.mxu0 %v1028_v14  ;;  %v1024_v14 = vld [vmem:[#allocation6 + $0x48] sm:$0xff] }
 0x194   : > { %1104 = vmatpush1.msra.mxu0 %v1027_v15  ;;  %v1026_v15 = vld [vmem:[#allocation6 + $0x58] sm:$0xff] }
 0x195   : > { %1105 = vmatprep.subr.mxu0 %v1024_v14 }
 0x23b   : > { %v3047_v42 = vpop.f32.mrf.mxu0 }
 0x23c   : > { %875 = vrot.lane.b32.xlu1 %v3047_v42, %s2832_s25  ;;  %v783_v45 = vmul.f32 %v3047_v42, %v2663_v43  ;;  %v790_v48 = vmul.f32 %v3047_v42, %v2664_v46 }
 0x23d   : > { %v3053_v44 = vpop.f32.mrf.mxu0 }
 0x23e   : > { %873 = vrot.lane.b32.xlu0 %v3053_v44, %s2832_s25  ;;  %v782_v47 = vmul.f32 %v2663_v43, %v3053_v44  ;;  %v789_v49 = vmul.f32 %v2664_v46, %v3053_v44 }
 0x240   : > { %863 = vrot.lane.b32.xlu1 %v783_v45, %s2833_s30 }
 0x242   : > { %861 = vrot.lane.b32.xlu0 %v782_v47, %s2833_s30 }
 0x244   : > { %851 = vrot.lane.b32.xlu1 %v790_v48, %s2826_s26 }
 0x246   : > { %849 = vrot.lane.b32.xlu0 %v789_v49, %s2826_s26 }
 0x248   : > { %837 = vrot.lane.b32.xlu1 %v783_v45, %s2827_s27 }
 0x24a   : > { %835 = vrot.lane.b32.xlu0 %v782_v47, %s2827_s27 }
 0x24c   : > { %826 = vrot.lane.b32.xlu1 %v790_v48, %s2834_s16 }
 0x24e   : > { %824 = vrot.lane.b32.xlu0 %v789_v49, %s2834_s16  ;;  %s2840_s16 = smov 97  }
 0x250   : > { %812 = vrot.lane.b32.xlu1 %v3047_v42, %s2835_s17 }
 0x252   : > { %810 = vrot.lane.b32.xlu0 %v3053_v44, %s2835_s17  ;;  %s2841_s17 = smov 31  }
 0x254   : > { %798 = vrot.lane.b32.xlu1 %v783_v45, %s2836_s20 }
 0x256   : > { %796 = vrot.lane.b32.xlu0 %v782_v47, %s2836_s20  ;;  %v894_v47 = vld [vmem:[%s3801_s4] sm:$0xff]  ;;  %s2842_s20 = smov 33  }
 0x258   : > { %887 = vrot.lane.b32.xlu1 %v790_v48, %s2837_s21  ;;  %v1078_v48 = vld [vmem:[#allocation6 + $0x1f8] sm:$0xff] }
 0x25a   : > { %885 = vrot.lane.b32.xlu0 %v789_v49, %s2837_s21  ;;  %s2843_s21 = smov 95  }
 0x25c   : > { %920 = vperm.xlu1 %2771, %v916_v51   ;;  %v1077_v51 = vld [vmem:[#allocation6 + $0x1f0] sm:$0xff] }
 0x25e   : > { %925 = vperm.xlu0 %2770, %v917_v52   ;;  %v1074_v52 = vld [vmem:[#allocation6 + $0x1d8] sm:$0xff] }
 0x2ae   : > { %v876_v16 = vpop.permute.xlu1 %875 }
 0x2af   : > { %881 = vst.msk [vmem:[#allocation3 + $0x78] sm:$0xff] %vm879_vm14, %v876_v16  ;;  %v1023_v16 = vld [vmem:[#allocation6 + $0x40] sm:$0xff] }
 0x2b0   : > { %v874_v17 = vpop.permute.xlu0 %873  ;;  %1106 = vmatpush1.msra.mxu0 %v1023_v16 }
 0x2b1   : > { %880 = vst.msk [vmem:[#allocation3 + $0x70] sm:$0xff] %vm879_vm14, %v874_v17  ;;  %v1025_v17 = vld [vmem:[#allocation6 + $0x50] sm:$0xff]  ;;  %vm1294_vm14 = vcmask 269312  }
 0x2b2   : > { %v864_v18 = vpop.permute.xlu1 %863  ;;  %1295 = vst.msk [vmem:[#allocation4] sm:$0xff] %vm1294_vm14, %v2822_v0  ;;  %1296 = vst.msk [vmem:[#allocation4 + $0x20] sm:$0xff] %vm1294_vm14, %v2822_v0 }
 0x2b3   : > { %869 = vst.msk [vmem:[#allocation3 + $0x68] sm:$0xff] %vm867_vm15, %v864_v18  ;;  %v1020_v18 = vld [vmem:[#allocation6 + $0x28] sm:$0xff] }
 0x2b4   : > { %v862_v19 = vpop.permute.xlu0 %861  ;;  %1107 = vmatprep.subr.mxu0 %v1020_v18  ;;  %1989 = vst.msk [vmem:[#allocation5] sm:$0xff] %vm1294_vm14, %v2822_v0  ;;  %1990 = vst.msk [vmem:[#allocation5 + $0x20] sm:$0xff] %vm1294_vm14, %v2822_v0 }
 0x2b5   : > { %868 = vst.msk [vmem:[#allocation3 + $0x60] sm:$0xff] %vm867_vm15, %v862_v19  ;;  %v1022_v19 = vld [vmem:[#allocation6 + $0x38] sm:$0xff]  ;;  %vm1614_vm15 = vcmask 1048312  }
 0x2b6   : > { %v852_v20 = vpop.permute.xlu1 %851  ;;  %v913_v21 = vld [vmem:[#allocation3 + $0x78] sm:$0xff]  ;;  %1616 = vst.msk [vmem:[#allocation4 + $0x238] sm:$0xff] %vm1614_vm15, %v2822_v0  ;;  %1615 = vst.msk [vmem:[#allocation4 + $0x218] sm:$0xff] %vm1614_vm15, %v2822_v0 }
 0x2b7   : > { %857 = vst.msk [vmem:[#allocation3 + $0x58] sm:$0xff] %vm855_vm1, %v852_v20  ;;  %935 = vmatpush1.msra.mxu1 %v913_v21  ;;  %v1019_v20 = vld [vmem:[#allocation6 + $0x20] sm:$0xff]  ;;  %v1021_v21 = vld [vmem:[#allocation6 + $0x30] sm:$0xff] }
 0x2b8   : > { %936 = vmatprep.subr.mxu1 %v2822_v0  ;;  %v850_v22 = vpop.permute.xlu0 %849  ;;  %v912_v23 = vld [vmem:[#allocation3 + $0x70] sm:$0xff]  ;;  %1108 = vmatpush1.msra.mxu0 %v1019_v20  ;;  %2301 = vst.msk [vmem:[#allocation5 + $0x218] sm:$0xff] %vm1614_vm15, %v2822_v0  ;;  %2302 = vst.msk [vmem:[#allocation5 + $0x238] sm:$0xff] %vm1614_vm15, %v2822_v0 }
 0x2b9   : > { %856 = vst.msk [vmem:[#allocation3 + $0x50] sm:$0xff] %vm855_vm1, %v850_v22  ;;  %937 = vmatpush1.msra.mxu1 %v912_v23  ;;  %v1016_v22 = vld [vmem:[#allocation6 + $0x8] sm:$0xff]  ;;  %v1018_v23 = vld [vmem:[#allocation6 + $0x18] sm:$0xff] }
 0x2ba   : > { %v838_v24 = vpop.permute.xlu1 %837  ;;  %938 = vmatprep.subr.mxu1 %v2822_v0  ;;  %v911_v25 = vld [vmem:[#allocation3 + $0x68] sm:$0xff]  ;;  %1109 = vmatprep.subr.mxu0 %v1016_v22 }
 0x2bb   : > { %843 = vst.msk [vmem:[#allocation3 + $0x38] sm:$0xff] %vm841_vm2, %v838_v24  ;;  %939 = vmatpush1.msra.mxu1 %v911_v25  ;;  %v1015_v24 = vld [vmem:[#allocation6] sm:$0xff]  ;;  %v1017_v25 = vld [vmem:[#allocation6 + $0x10] sm:$0xff] }
 0x2bc   : > { %940 = vmatprep.subr.mxu1 %v2822_v0  ;;  %v836_v26 = vpop.permute.xlu0 %835  ;;  %v910_v27 = vld [vmem:[#allocation3 + $0x60] sm:$0xff]  ;;  %1110 = vmatpush1.msra.mxu0 %v1015_v24 }
 0x2bd   : > { %842 = vst.msk [vmem:[#allocation3 + $0x30] sm:$0xff] %vm841_vm2, %v836_v26  ;;  %941 = vmatpush1.msra.mxu1 %v910_v27 }
 0x2be   : > { %v827_v28 = vpop.permute.xlu1 %826  ;;  %942 = vmatprep.subr.mxu1 %v2822_v0  ;;  %v909_v29 = vld [vmem:[#allocation3 + $0x58] sm:$0xff] }
 0x2bf   : > { %832 = vst.msk [vmem:[#allocation3 + $0x28] sm:$0xff] %vm830_vm3, %v827_v28  ;;  %943 = vmatpush1.msra.mxu1 %v909_v29 }
 0x2c0   : > { %944 = vmatprep.subr.mxu1 %v2822_v0  ;;  %v825_v30 = vpop.permute.xlu0 %824  ;;  %v908_v31 = vld [vmem:[#allocation3 + $0x50] sm:$0xff] }
 0x2c1   : > { %831 = vst.msk [vmem:[#allocation3 + $0x20] sm:$0xff] %vm830_vm3, %v825_v30  ;;  %945 = vmatpush1.msra.mxu1 %v908_v31  ;;  %vm1591_vm3 = vcmask 785408  }
 0x2c2   : > { %v813_v32 = vpop.permute.xlu1 %812  ;;  %946 = vmatprep.subr.mxu1 %v2822_v0  ;;  %v905_v35 = vld [vmem:[#allocation3 + $0x38] sm:$0xff] }
 0x2c3   : > { %818 = vst.msk [vmem:[#allocation3 + $0x18] sm:$0xff] %vm816_vm4, %v813_v32  ;;  %947 = vmatpush1.msra.mxu1 %v3047_v42 }
 0x2c4   : > { %948 = vmatprep.subr.mxu1 %v2822_v0  ;;  %v811_v33 = vpop.permute.xlu0 %810  ;;  %v904_v37 = vld [vmem:[#allocation3 + $0x30] sm:$0xff] }
 0x2c5   : > { %817 = vst.msk [vmem:[#allocation3 + $0x10] sm:$0xff] %vm816_vm4, %v811_v33  ;;  %949 = vmatpush1.msra.mxu1 %v3053_v44  ;;  %vm1384_vm4 = vcmask 1047808  }
 0x2c6   : > { %v799_v34 = vpop.permute.xlu1 %798  ;;  %950 = vmatprep.subr.mxu1 %v2822_v0  ;;  %v903_v39 = vld [vmem:[#allocation3 + $0x28] sm:$0xff] }
 0x2c7   : > { %804 = vst.msk [vmem:[#allocation3 + $0x8] sm:$0xff] %vm802_vm7, %v799_v34  ;;  %951 = vmatpush1.msra.mxu1 %v905_v35 }
 0x2c8   : > { %952 = vmatprep.subr.mxu1 %v2822_v0  ;;  %v797_v36 = vpop.permute.xlu0 %796  ;;  %v902_v41 = vld [vmem:[#allocation3 + $0x20] sm:$0xff] }
 0x2c9   : > { %803 = vst.msk [vmem:[#allocation3] sm:$0xff] %vm802_vm7, %v797_v36  ;;  %953 = vmatpush1.msra.mxu1 %v904_v37  ;;  %vm1549_vm7 = vcmask 793600  }
 0x2ca   : > { %v888_v38 = vpop.permute.xlu1 %887  ;;  %954 = vmatprep.subr.mxu1 %v2822_v0  ;;  %v901_v42 = vld [vmem:[#allocation3 + $0x18] sm:$0xff] }
 0x2cb   : > { %893 = vst.msk [vmem:[#allocation3 + $0x88] sm:$0xff] %vm891_vm8, %v888_v38  ;;  %955 = vmatpush1.msra.mxu1 %v903_v39  ;;  %v1235_v38 = vlaneseq }
 0x2cc   : > { %956 = vmatprep.subr.mxu1 %v2822_v0  ;;  %v886_v40 = vpop.permute.xlu0 %885  ;;  %v900_v43 = vld [vmem:[#allocation3 + $0x10] sm:$0xff] }
 0x2cd   : > { %892 = vst.msk [vmem:[#allocation3 + $0x80] sm:$0xff] %vm891_vm8, %v886_v40  ;;  %957 = vmatpush1.msra.mxu1 %v902_v41  ;;  %vm1433_vm8 = vcmask 1047800  }
 0x2ce   : > { %958 = vmatprep.subr.mxu1 %v2822_v0  ;;  %v899_v44 = vld [vmem:[#allocation3 + $0x8] sm:$0xff] }
 0x2cf   : > { %959 = vmatpush1.msra.mxu1 %v901_v42 }
 0x2d0   : > { %960 = vmatprep.subr.mxu1 %v2822_v0  ;;  %v898_v45 = vld [vmem:[#allocation3] sm:$0xff] }
 0x2d1   : > { %961 = vmatpush1.msra.mxu1 %v900_v43  ;;  %v1236_v43 = vshrl.u32 %v1235_v38, 7 }
 0x2d2   : > { %962 = vmatprep.subr.mxu1 %v2822_v0  ;;  %v915_v46 = vld [vmem:[#allocation3 + $0x88] sm:$0xff] }
 0x2d3   : > { %963 = vmatpush1.msra.mxu1 %v899_v44 }
 0x2d4   : > { %964 = vmatprep.subr.mxu1 %v2822_v0  ;;  %v914_v49 = vld [vmem:[#allocation3 + $0x80] sm:$0xff] }
 0x2d5   : > { %965 = vmatpush1.msra.mxu1 %v898_v45 }
 0x2d6   : > { %994 = vmatprep.subr.mxu1 %v2822_v0 }
 0x2d7   : > { %995 = vmatpush2.msra.mxu1 %v915_v46  ;;  %v921_v26 = vpop.permute.xlu1 %920 }
 0x2d8   : > { %996 = vmatprep.subr.mxu1 %v2822_v0 }
 0x2d9   : > { %997 = vmatpush2.msra.mxu1 %v914_v49  ;;  %v926_v31 = vpop.permute.xlu0 %925  ;;  %v1233_v49 = vld [vmem:[%s3806_s9] ss:$2 sm:$0xf] }
 0x2da   : > { %999 = vmatmul.mubr.f32.vlgmr.msra.gmra.mxu1 %v894_v47  ;;  %1156 = vmatprep.subr.mxu1 %v1078_v48  ;;  %v3153_v48 = vsub.s32 2, %v1236_v43 }
 0x2db   : > { %2666 = vmatprep.mubr.msk.f32.mxu1 %vm805_vm11, %v897_v50  ;;  %1157 = vmatpush1.msra.mxu1 %v1077_v51  ;;  %v3165_v51 = vsub.s32 0, %v1236_v43 }
 0x2dc   : > { %1158 = vmatprep.subr.mxu1 %v1074_v52  ;;  %v3163_v50 = vrot.slane %v1233_v49, %v3153_v48  ;;  %v3173_v52 = vsub.s32 1, %v1236_v43 }
 0x2dd   : > { %1159 = vmatpush1.msra.mxu1 %v1073_v53 }
 0x2de   : > { %1004 = vmatmul.mubr.f32.gmra.mxu1 %v896_v54  ;;  %1160 = vmatprep.subr.mxu1 %v1070_v55  ;;  %v1238_v54 = vrot.slane %v1233_v49, %v3165_v51  ;;  %v2667_v55 = vld [vmem:[%s3806_s9 + $0x1] ss:$2 sm:$0xf] }
 0x2df   : > { %1161 = vmatpush1.msra.mxu1 %v1069_v56  ;;  %1220 = vmatprep.mubr.f32.mxu1 %v2822_v0  ;;  %v1242_v56 = vrot.slane %v1233_v49, %v3173_v52 }
 0x2e0   : > { %1162 = vmatprep.subr.mxu1 %v1066_v57  ;;  %v3185_v57 = vsub.s32 3, %v1236_v43 }
 0x2e1   : > { %1163 = vmatpush1.msra.mxu1 %v1065_v58 }
 0x2e2   : > { %1164 = vmatprep.subr.mxu1 %v1062_v59  ;;  %v1277_v59 = vrot.slane %v2667_v55, %v3153_v48 }
 0x2e3   : > { %1165 = vmatpush1.msra.mxu1 %v1061_v60 }
 0x2e4   : > { %1166 = vmatprep.subr.mxu1 %v1058_v61  ;;  %v1250_v61 = vrot.slane %v1233_v49, %v3185_v57 }
 0x2e5   : > { %1167 = vmatpush1.msra.mxu1 %v1057_v62 }
 0x2e6   : > { %1168 = vmatprep.subr.mxu1 %v1054_v63  ;;  %v1269_v63 = vrot.slane %v2667_v55, %v3165_v51 }
 0x2e7   : > { %1169 = vmatpush1.msra.mxu1 %v1053_v1 }
 0x2e8   : > { %1170 = vmatprep.subr.mxu1 %v1050_v2  ;;  %v1273_v2 = vrot.slane %v2667_v55, %v3173_v52 }
 0x2e9   : > { %1171 = vmatpush1.msra.mxu1 %v1049_v3 }
 0x2ea   : > { %1172 = vmatprep.subr.mxu1 %v1046_v4 }
 0x2eb   : > { %1173 = vmatpush1.msra.mxu1 %v1045_v5  ;;  %v1281_v5 = vrot.slane %v2667_v55, %v3185_v57 }
 0x2ec   : > { %1174 = vmatprep.subr.mxu1 %v1042_v6 }
 0x2ed   : > { %1175 = vmatpush1.msra.mxu1 %v1041_v7 }
 0x2ee   : > { %1176 = vmatprep.subr.mxu1 %v1038_v8 }
 0x2ef   : > { %1177 = vmatpush1.msra.mxu1 %v1037_v9 }
 0x2f0   : > { %1178 = vmatprep.subr.mxu1 %v1034_v10 }
 0x2f1   : > { %1179 = vmatpush1.msra.mxu1 %v1033_v11 }
 0x2f2   : > { %1180 = vmatprep.subr.mxu1 %v1030_v12 }
 0x2f3   : > { %1181 = vmatpush1.msra.mxu1 %v1029_v13 }
 0x2f4   : > { %1182 = vmatprep.subr.mxu1 %v1026_v15  ;;  %v1657_v15 = vld [vmem:[%s3804_s7 + $0x8] sm:$0xff] }
 0x2f5   : > { %1183 = vmatpush1.msra.mxu1 %v1025_v17 }
 0x2f6   : > { %1184 = vmatprep.subr.mxu1 %v1022_v19 }
 0x2f7   : > { %1185 = vmatpush1.msra.mxu1 %v1021_v21 }
 0x2f8   : > { %1186 = vmatprep.subr.mxu1 %v1018_v23 }
 0x2f9   : > { %1187 = vmatpush1.msra.mxu1 %v1017_v25  ;;  %v1733_v25 = vld [vmem:[%s3805_s8 + $0x8] sm:$0xff] }
 0x39a   : > { %v1000_v27 = vpop.f32.mrf.mxu1 }
 0x39b   : > { %v1001_v28 = vadd.f32 %v1000_v27, %v921_v26 }
 0x39c   : > { %v1002_v29 = vpop.f32.mrf.mxu1 }
 0x39d   : > { %vm1009_vm9 = vcmp.ge.f32.partialorder %v1001_v28, 0.0  ;;  %v1011_v30 = vmul.f32 0.2, %v1001_v28 }
 0x39e   : > { %v1005_v32 = vpop.f32.mrf.mxu1 }
 0x39f   : > { %v1006_v33 = vadd.f32 %v1005_v32, %v926_v31  ;;  %v1013_v34 = vsel %vm1009_vm9, %v1001_v28, %v1011_v30  ;;  %v1732_v28 = vld [vmem:[%s3805_s8] sm:$0xff]  ;;  %vm1335_vm9 = vcmask 1047816  }
 0x3a0   : > { %1144 = vmatmul.mubr.f32.vlgmr.msra.gmra.mxu0 %v1013_v34  ;;  %1221 = vmatmul.mubr.f32.vlgmr.msra.gmra.mxu1 %v1013_v34  ;;  %v1007_v35 = vpop.f32.mrf.mxu1 }
 0x3a1   : > { %v1012_v36 = vmul.f32 0.2, %v1006_v33  ;;  %1149 = vmatprep.mubr.f32.mxu0 %v2822_v0  ;;  %1226 = vmatprep.mubr.f32.mxu1 %v2822_v0  ;;  %vm1010_vm10 = vcmp.ge.f32.partialorder %v1006_v33, 0.0 }
 0x3a3   : > { %v1014_v37 = vsel %vm1010_vm10, %v1006_v33, %v1012_v36  ;;  %vm3813_vm10 = vcmask 777216  }
 0x3a4   : > { %1150 = vmatmul.mubr.f32.gmra.mxu0 %v1014_v37  ;;  %1227 = vmatmul.mubr.f32.gmra.mxu1 %v1014_v37 }
 0x3a5   : > { %2668 = vmatprep.mubr.msk.f32.mxu0 %vm805_vm11, %v1657_v15  ;;  %2670 = vmatprep.mubr.msk.f32.mxu1 %vm805_vm11, %v1657_v15 }
 0x460   : > { %v3129_v39 = vpop.f32.mrf.mxu0  ;;  %v3131_v40 = vpop.f32.mrf.mxu1 }
 0x461   : > { %1579 = vrot.lane.b32.xlu1 %v3131_v40, %s2838_s23  ;;  %v1257_v53 = vmul.f32 %v3163_v50, %v3131_v40  ;;  %v1255_v58 = vmul.f32 %v1238_v54, %v3129_v39  ;;  %v1288_v62 = vmul.f32 %v1277_v59, %v3131_v40  ;;  %v3202_v3 = vmul.f32 %v1269_v63, %v3129_v39 }
 0x462   : > { %v3135_v41 = vpop.f32.mrf.mxu0  ;;  %v3137_v42 = vpop.f32.mrf.mxu1 }
 0x463   : > { %1577 = vrot.lane.b32.xlu0 %v3135_v41, %s2838_s23  ;;  %v1256_v60 = vmul.f32 %v1242_v56, %v3135_v41  ;;  %v1258_v1 = vmul.f32 %v1250_v61, %v3137_v42  ;;  %v1287_v4 = vmul.f32 %v1273_v2, %v3135_v41  ;;  %v3211_v6 = vmul.f32 %v1281_v5, %v3137_v42 }
 0x464   : > { %v3141_v44 = vpop.f32.mrf.mxu0  ;;  %v3143_v45 = vpop.f32.mrf.mxu1 }
 0x465   : > { %1575 = vrot.lane.b32.xlu1 %v3129_v39, %s2838_s23  ;;  %v1261_v7 = vmul.f32 %v3163_v50, %v3143_v45  ;;  %v1292_v8 = vmul.f32 %v1277_v59, %v3143_v45  ;;  %v1259_v9 = vmul.f32 %v1238_v54, %v3141_v44  ;;  %v1290_v12 = vmul.f32 %v1269_v63, %v3141_v44 }
 0x466   : > { %v3147_v46 = vpop.f32.mrf.mxu0  ;;  %v3149_v47 = vpop.f32.mrf.mxu1 }
 0x467   : > { %1581 = vrot.lane.b32.xlu0 %v3137_v42, %s2838_s23  ;;  %v1260_v10 = vmul.f32 %v1242_v56, %v3147_v46  ;;  %v1262_v11 = vmul.f32 %v1250_v61, %v3149_v47  ;;  %v1291_v13 = vmul.f32 %v1273_v2, %v3147_v46  ;;  %v1293_v14 = vmul.f32 %v1281_v5, %v3149_v47 }
 0x469   : > { %1354 = vrot.lane.b32.xlu1 %v3129_v39, %s2839_s28 }
 0x46b   : > { %1356 = vrot.lane.b32.xlu0 %v3135_v41, %s2839_s28 }
 0x46d   : > { %1358 = vrot.lane.b32.xlu1 %v3131_v40, %s2839_s28 }
 0x46f   : > { %1360 = vrot.lane.b32.xlu0 %v3137_v42, %s2839_s28 }
 0x471   : > { %1537 = vrot.lane.b32.xlu1 %v1257_v53, %s2840_s16 }
 0x473   : > { %1587 = vrot.lane.b32.xlu0 %v3143_v45, %s2838_s23 }
 0x475   : > { %1533 = vrot.lane.b32.xlu1 %v1255_v58, %s2840_s16 }
 0x477   : > { %1535 = vrot.lane.b32.xlu0 %v1256_v60, %s2840_s16 }
 0x479   : > { %1496 = vrot.lane.b32.xlu1 %v1288_v62, %s2826_s26 }
 0x47b   : > { %1539 = vrot.lane.b32.xlu0 %v1258_v1, %s2840_s16 }
 0x47d   : > { %1492 = vrot.lane.b32.xlu1 %v3202_v3, %s2826_s26 }
 0x47f   : > { %1494 = vrot.lane.b32.xlu0 %v1287_v4, %s2826_s26 }
 0x481   : > { %1444 = vrot.lane.b32.xlu1 %v1255_v58, %s2827_s27 }
 0x483   : > { %1498 = vrot.lane.b32.xlu0 %v3211_v6, %s2826_s26 }
 0x485   : > { %1448 = vrot.lane.b32.xlu1 %v1257_v53, %s2827_s27 }
 0x487   : > { %1446 = vrot.lane.b32.xlu0 %v1256_v60, %s2827_s27 }
 0x489   : > { %1403 = vrot.lane.b32.xlu1 %v3202_v3, %s2841_s17 }
 0x48b   : > { %1450 = vrot.lane.b32.xlu0 %v1258_v1, %s2827_s27 }
 0x48d   : > { %1407 = vrot.lane.b32.xlu1 %v1288_v62, %s2841_s17 }
 0x48f   : > { %1405 = vrot.lane.b32.xlu0 %v1287_v4, %s2841_s17 }
 0x491   : > { %1305 = vrot.lane.b32.xlu1 %v1255_v58, %s2842_s20 }
 0x493   : > { %1409 = vrot.lane.b32.xlu0 %v3211_v6, %s2841_s17 }
 0x495   : > { %1309 = vrot.lane.b32.xlu1 %v1257_v53, %s2842_s20 }
 0x497   : > { %1307 = vrot.lane.b32.xlu0 %v1256_v60, %s2842_s20 }
 0x499   : > { %1621 = vrot.lane.b32.xlu1 %v1288_v62, %s2843_s21 }
 0x49b   : > { %1311 = vrot.lane.b32.xlu0 %v1258_v1, %s2842_s20 }
 0x49d   : > { %1583 = vrot.lane.b32.xlu1 %v3141_v44, %s2838_s23 }
 0x49f   : > { %1619 = vrot.lane.b32.xlu0 %v1287_v4, %s2843_s21 }
 0x4a1   : > { %1362 = vrot.lane.b32.xlu1 %v3141_v44, %s2839_s28 }
 0x4a3   : > { %1589 = vrot.lane.b32.xlu0 %v3149_v47, %s2838_s23 }
 0x4a5   : > { %1366 = vrot.lane.b32.xlu1 %v3143_v45, %s2839_s28 }
 0x4a7   : > { %1364 = vrot.lane.b32.xlu0 %v3147_v46, %s2839_s28 }
 0x4a9   : > { %1585 = vrot.lane.b32.xlu1 %v3147_v46, %s2838_s23 }
 0x4ab   : > { %1368 = vrot.lane.b32.xlu0 %v3149_v47, %s2839_s28 }
 0x4ad   : > { %1545 = vrot.lane.b32.xlu1 %v1261_v7, %s2840_s16 }
 0x4af   : > { %1629 = vrot.lane.b32.xlu0 %v1292_v8, %s2843_s21 }
 0x4b1   : > { %1541 = vrot.lane.b32.xlu1 %v1259_v9, %s2840_s16 }
 0x4b3   : > { %1543 = vrot.lane.b32.xlu0 %v1260_v10, %s2840_s16 }
 0x4b5   : > { %1504 = vrot.lane.b32.xlu1 %v1292_v8, %s2826_s26 }
 0x4b7   : > { %1547 = vrot.lane.b32.xlu0 %v1262_v11, %s2840_s16 }
 0x4b9   : > { %1500 = vrot.lane.b32.xlu1 %v1290_v12, %s2826_s26 }
 0x4bb   : > { %1502 = vrot.lane.b32.xlu0 %v1291_v13, %s2826_s26 }
 0x4bd   : > { %1452 = vrot.lane.b32.xlu1 %v1259_v9, %s2827_s27 }
 0x4bf   : > { %1506 = vrot.lane.b32.xlu0 %v1293_v14, %s2826_s26 }
 0x4c1   : > { %1456 = vrot.lane.b32.xlu1 %v1261_v7, %s2827_s27 }
 0x4c3   : > { %1454 = vrot.lane.b32.xlu0 %v1260_v10, %s2827_s27 }
 0x4c5   : > { %1411 = vrot.lane.b32.xlu1 %v1290_v12, %s2841_s17 }
 0x4c7   : > { %1458 = vrot.lane.b32.xlu0 %v1262_v11, %s2827_s27 }
 0x4c9   : > { %1415 = vrot.lane.b32.xlu1 %v1292_v8, %s2841_s17 }
 0x4cb   : > { %1413 = vrot.lane.b32.xlu0 %v1291_v13, %s2841_s17 }
 0x4cd   : > { %1313 = vrot.lane.b32.xlu1 %v1259_v9, %s2842_s20 }
 0x4cf   : > { %1417 = vrot.lane.b32.xlu0 %v1293_v14, %s2841_s17 }
 0x4d1   : > { %1317 = vrot.lane.b32.xlu1 %v1261_v7, %s2842_s20 }
 0x4d3   : > { %v1580_v16 = vpop.permute.xlu1 %1579  ;;  %1315 = vrot.lane.b32.xlu0 %v1260_v10, %s2842_s20 }
 0x4d5   : > { %1625 = vrot.lane.b32.xlu1 %v1290_v12, %s2843_s21  ;;  %v1578_v17 = vpop.permute.xlu0 %1577 }
 0x4d6   : > { %v3292_v0 = vsel %vm1591_vm3, %v1578_v17, %v1580_v16 }
 0x4d7   : > { %v1576_v18 = vpop.permute.xlu1 %1575  ;;  %1319 = vrot.lane.b32.xlu0 %v1262_v11, %s2842_s20 }
 0x4d8   : > { %v3296_v19 = vsel %vm1591_vm3, %v1576_v18, %v1578_v17 }
 0x4d9   : > { %1627 = vrot.lane.b32.xlu1 %v1291_v13, %s2843_s21  ;;  %v1582_v20 = vpop.permute.xlu0 %1581 }
 0x4da   : > { %v3300_v21 = vsel %vm1591_vm3, %v1580_v16, %v1582_v20  ;;  %1609 = vst.msk [vmem:[#allocation4 + $0x1d8] sm:$0xff] %vm1591_vm3, %v1582_v20 }
 0x4db   : > { %v1355_v22 = vpop.permute.xlu1 %1354  ;;  %1631 = vrot.lane.b32.xlu0 %v1293_v14, %s2843_s21 }
 0x4dc   : > { %1385 = vst.msk [vmem:[#allocation4 + $0x40] sm:$0xff] %vm1384_vm4, %v1355_v22 }
 0x4dd   : > { %1617 = vrot.lane.b32.xlu1 %v3202_v3, %s2843_s21  ;;  %v1357_v23 = vpop.permute.xlu0 %1356 }
 0x4de   : > { %v3308_v24 = vsel %vm551_vm0, %v1355_v22, %v1357_v23 }
 0x4df   : > { %v1359_v26 = vpop.permute.xlu1 %1358  ;;  %1623 = vrot.lane.b32.xlu0 %v3211_v6, %s2843_s21 }
 0x4e0   : > { %v3316_v27 = vsel %vm551_vm0, %v1357_v23, %v1359_v26 }
 0x4e1   : > { %1741 = vperm.xlu1 %2771, %v1733_v25   ;;  %v1361_v29 = vpop.permute.xlu0 %1360 }
 0x4e2   : > { %v3322_v30 = vsel %vm551_vm0, %v1359_v26, %v1361_v29 }
 0x4e3   : > { %v1538_v31 = vpop.permute.xlu1 %1537  ;;  %1736 = vperm.xlu0 %2770, %v1732_v28  }
 0x4e5   : > { %v1588_v32 = vpop.permute.xlu0 %1587 }
 0x4e7   : > { %v1534_v33 = vpop.permute.xlu1 %1533 }
 0x4e9   : > { %v1536_v34 = vpop.permute.xlu0 %1535 }
 0x4ea   : > { %v3325_v35 = vsel %vm1549_vm7, %v1534_v33, %v1536_v34  ;;  %v3328_v36 = vsel %vm1549_vm7, %v1536_v34, %v1538_v31 }
 0x4eb   : > { %v1497_v37 = vpop.permute.xlu1 %1496 }
 0x4ed   : > { %v1540_v38 = vpop.permute.xlu0 %1539 }
 0x4ee   : > { %v3331_v43 = vsel %vm1549_vm7, %v1538_v31, %v1540_v38  ;;  %1567 = vst.msk [vmem:[#allocation4 + $0x198] sm:$0xff] %vm1549_vm7, %v1540_v38 }
 0x4ef   : > { %v1493_v49 = vpop.permute.xlu1 %1492 }
 0x4f1   : > { %v1495_v50 = vpop.permute.xlu0 %1494 }
 0x4f2   : > { %v3335_v53 = vsel %vm855_vm1, %v1493_v49, %v1495_v50  ;;  %v3338_v54 = vsel %vm855_vm1, %v1495_v50, %v1497_v37 }
 0x4f3   : > { %v1445_v55 = vpop.permute.xlu1 %1444 }
 0x4f4   : > { %1474 = vst.msk [vmem:[#allocation4 + $0xc0] sm:$0xff] %vm841_vm2, %v1445_v55 }
 0x4f5   : > { %v1499_v56 = vpop.permute.xlu0 %1498 }
 0x4f6   : > { %v3342_v58 = vsel %vm855_vm1, %v1497_v37, %v1499_v56  ;;  %1525 = vst.msk [vmem:[#allocation4 + $0x158] sm:$0xff] %vm855_vm1, %v1499_v56  ;;  %v1719_v56 = vld [vmem:[#allocation4 + $0x1d8] sm:$0xff] }
 0x4f7   : > { %v1449_v59 = vpop.permute.xlu1 %1448 }
 0x4f9   : > { %v1447_v60 = vpop.permute.xlu0 %1446 }
 0x4fa   : > { %v3346_v61 = vsel %vm544_vm6, %v1445_v55, %v1447_v60  ;;  %v3349_v62 = vsel %vm544_vm6, %v1447_v60, %v1449_v59 }
 0x4fb   : > { %v1404_v63 = vpop.permute.xlu1 %1403 }
 0x4fc   : > { %1434 = vst.msk [vmem:[#allocation4 + $0x80] sm:$0xff] %vm1433_vm8, %v1404_v63 }
 0x4fd   : > { %v1451_v1 = vpop.permute.xlu0 %1450 }
 0x4fe   : > { %v3353_v2 = vsel %vm544_vm6, %v1449_v59, %v1451_v1 }
 0x4ff   : > { %v1408_v3 = vpop.permute.xlu1 %1407 }
 0x501   : > { %v1406_v4 = vpop.permute.xlu0 %1405 }
 0x502   : > { %v3356_v5 = vsel %vm558_vm5, %v1404_v63, %v1406_v4  ;;  %v3359_v6 = vsel %vm558_vm5, %v1406_v4, %v1408_v3 }
 0x503   : > { %v1306_v7 = vpop.permute.xlu1 %1305 }
 0x504   : > { %1336 = vst.msk [vmem:[#allocation4] sm:$0xff] %vm1335_vm9, %v1306_v7 }
 0x505   : > { %v1410_v8 = vpop.permute.xlu0 %1409 }
 0x506   : > { %v3363_v9 = vsel %vm558_vm5, %v1408_v3, %v1410_v8 }
 0x507   : > { %v1310_v10 = vpop.permute.xlu1 %1309 }
 0x509   : > { %v1308_v11 = vpop.permute.xlu0 %1307 }
 0x50a   : > { %v3366_v12 = vsel %vm1294_vm14, %v1306_v7, %v1308_v11  ;;  %v3369_v13 = vsel %vm1294_vm14, %v1308_v11, %v1310_v10 }
 0x50b   : > { %v3371_v14 = vpop.permute.xlu1 %1621 }
 0x50d   : > { %v1312_v15 = vpop.permute.xlu0 %1311 }
 0x50e   : > { %v3374_v16 = vsel %vm1294_vm14, %v1310_v10, %v1312_v15 }
 0x50f   : > { %v1584_v17 = vpop.permute.xlu1 %1583 }
 0x511   : > { %v3376_v18 = vpop.permute.xlu0 %1619 }
 0x512   : > { %v3381_v20 = vsel %vm3813_vm10, %v3376_v18, %v3371_v14 }
 0x513   : > { %v1363_v22 = vpop.permute.xlu1 %1362 }
 0x514   : > { %1389 = vst.msk [vmem:[#allocation4 + $0x60] sm:$0xff] %vm1384_vm4, %v1363_v22 }
 0x515   : > { %v1590_v23 = vpop.permute.xlu0 %1589 }
 0x516   : > { %v1597_v25 = vsel %vm1591_vm3, %v1588_v32, %v1590_v23  ;;  %1613 = vst.msk [vmem:[#allocation4 + $0x1f8] sm:$0xff] %vm1591_vm3, %v1590_v23 }
 0x517   : > { %v1367_v26 = vpop.permute.xlu1 %1366 }
 0x519   : > { %v1365_v28 = vpop.permute.xlu0 %1364 }
 0x51a   : > { %v3387_v29 = vsel %vm551_vm0, %v1363_v22, %v1365_v28  ;;  %v3390_v31 = vsel %vm551_vm0, %v1365_v28, %v1367_v26  ;;  %v1703_v28 = vld [vmem:[#allocation4 + $0x158] sm:$0xff] }
 0x51b   : > { %v1586_v33 = vpop.permute.xlu1 %1585 }
 0x51c   : > { %v1595_v34 = vsel %vm1591_vm3, %v1584_v17, %v1586_v33  ;;  %v1596_v37 = vsel %vm1591_vm3, %v1586_v33, %v1588_v32  ;;  %v1711_v17 = vld [vmem:[#allocation4 + $0x198] sm:$0xff] }
 0x51d   : > { %v1369_v38 = vpop.permute.xlu0 %1368  ;;  %v1723_v49 = vld [vmem:[#allocation4 + $0x1f8] sm:$0xff]  ;;  %1750 = vmatprep.subr.mxu0 %v1596_v37 }
 0x51e   : > { %v3395_v50 = vsel %vm551_vm0, %v1367_v26, %v1369_v38  ;;  %1827 = vmatprep.subr.mxu1 %v1723_v49  ;;  %1751 = vmatpush1.msra.mxu0 %v1595_v34  ;;  %v1676_v38 = vld [vmem:[#allocation4 + $0x80] sm:$0xff] }
 0x51f   : > { %v1546_v55 = vpop.permute.xlu1 %1545  ;;  %1828 = vmatpush1.msra.mxu1 %v1597_v25  ;;  %1752 = vmatprep.subr.mxu0 %v3292_v0 }
 0x520   : > { %1829 = vmatprep.subr.mxu1 %v1719_v56  ;;  %1753 = vmatpush1.msra.mxu0 %v3296_v19 }
 0x521   : > { %1830 = vmatpush1.msra.mxu1 %v3300_v21  ;;  %v3400_v59 = vpop.permute.xlu0 %1629 }
 0x523   : > { %v1542_v32 = vpop.permute.xlu1 %1541 }
 0x525   : > { %v1544_v60 = vpop.permute.xlu0 %1543 }
 0x526   : > { %v1553_v63 = vsel %vm1549_vm7, %v1542_v32, %v1544_v60  ;;  %v1554_v1 = vsel %vm1549_vm7, %v1544_v60, %v1546_v55 }
 0x527   : > { %v1505_v3 = vpop.permute.xlu1 %1504  ;;  %1754 = vmatprep.subr.mxu0 %v1554_v1 }
 0x528   : > { %1755 = vmatpush1.msra.mxu0 %v1553_v63 }
 0x529   : > { %v1548_v4 = vpop.permute.xlu0 %1547  ;;  %1756 = vmatprep.subr.mxu0 %v3328_v36 }
 0x52a   : > { %v1555_v0 = vsel %vm1549_vm7, %v1546_v55, %v1548_v4  ;;  %1571 = vst.msk [vmem:[#allocation4 + $0x1b8] sm:$0xff] %vm1549_vm7, %v1548_v4  ;;  %1757 = vmatpush1.msra.mxu0 %v3325_v35 }
 0x52b   : > { %v1501_v19 = vpop.permute.xlu1 %1500 }
 0x52d   : > { %v1503_v21 = vpop.permute.xlu0 %1502 }
 0x52e   : > { %v1511_v7 = vsel %vm855_vm1, %v1501_v19, %v1503_v21  ;;  %v1512_v8 = vsel %vm855_vm1, %v1503_v21, %v1505_v3 }
 0x52f   : > { %v1453_v10 = vpop.permute.xlu1 %1452  ;;  %1758 = vmatprep.subr.mxu0 %v1512_v8 }
 0x530   : > { %1478 = vst.msk [vmem:[#allocation4 + $0xe0] sm:$0xff] %vm841_vm2, %v1453_v10  ;;  %1759 = vmatpush1.msra.mxu0 %v1511_v7 }
 0x531   : > { %v1507_v11 = vpop.permute.xlu0 %1506  ;;  %v1715_v15 = vld [vmem:[#allocation4 + $0x1b8] sm:$0xff]  ;;  %1760 = vmatprep.subr.mxu0 %v3338_v54 }
 0x532   : > { %v1513_v36 = vsel %vm855_vm1, %v1505_v3, %v1507_v11  ;;  %1529 = vst.msk [vmem:[#allocation4 + $0x178] sm:$0xff] %vm855_vm1, %v1507_v11  ;;  %1831 = vmatprep.subr.mxu1 %v1715_v15  ;;  %1761 = vmatpush1.msra.mxu0 %v3335_v53 }
 0x533   : > { %v1457_v35 = vpop.permute.xlu1 %1456  ;;  %1832 = vmatpush1.msra.mxu1 %v1555_v0  ;;  %1762 = vmatprep.subr.mxu0 %v3147_v46 }
 0x534   : > { %1833 = vmatprep.subr.mxu1 %v1711_v17  ;;  %1763 = vmatpush1.msra.mxu0 %v3141_v44  ;;  %v1684_v44 = vld [vmem:[#allocation4 + $0xc0] sm:$0xff] }
 0x535   : > { %1834 = vmatpush1.msra.mxu1 %v3331_v43  ;;  %v1455_v22 = vpop.permute.xlu0 %1454  ;;  %1764 = vmatprep.subr.mxu0 %v3135_v41 }
 0x536   : > { %v1463_v54 = vsel %vm544_vm6, %v1453_v10, %v1455_v22  ;;  %v1464_v23 = vsel %vm544_vm6, %v1455_v22, %v1457_v35  ;;  %1765 = vmatpush1.msra.mxu0 %v3129_v39 }
 0x537   : > { %v1412_v53 = vpop.permute.xlu1 %1411  ;;  %1766 = vmatprep.subr.mxu0 %v1463_v54  ;;  %v1688_v25 = vld [vmem:[#allocation4 + $0xe0] sm:$0xff] }
 0x538   : > { %1438 = vst.msk [vmem:[#allocation4 + $0xa0] sm:$0xff] %vm1433_vm8, %v1412_v53  ;;  %1767 = vmatpush1.msra.mxu0 %v1688_v25 }
 0x539   : > { %v1459_v46 = vpop.permute.xlu0 %1458  ;;  %v1707_v26 = vld [vmem:[#allocation4 + $0x178] sm:$0xff]  ;;  %1768 = vmatprep.subr.mxu0 %v3346_v61 }
 0x53a   : > { %v1465_v43 = vsel %vm544_vm6, %v1457_v35, %v1459_v46  ;;  %1835 = vmatprep.subr.mxu1 %v1707_v26  ;;  %1769 = vmatpush1.msra.mxu0 %v1684_v44 }
 0x53b   : > { %v1416_v41 = vpop.permute.xlu1 %1415  ;;  %1836 = vmatpush1.msra.mxu1 %v1513_v36 }
 0x53c   : > { %1837 = vmatprep.subr.mxu1 %v1703_v28 }
 0x53d   : > { %1838 = vmatpush1.msra.mxu1 %v3342_v58  ;;  %v1414_v39 = vpop.permute.xlu0 %1413 }
 0x53e   : > { %v1422_v33 = vsel %vm558_vm5, %v1412_v53, %v1414_v39  ;;  %v1423_v34 = vsel %vm558_vm5, %v1414_v39, %v1416_v41  ;;  %1839 = vmatprep.subr.mxu1 %v3149_v47 }
 0x53f   : > { %v1314_v37 = vpop.permute.xlu1 %1313  ;;  %1840 = vmatpush1.msra.mxu1 %v3143_v45  ;;  %1770 = vmatprep.subr.mxu0 %v1422_v33  ;;  %v1680_v61 = vld [vmem:[#allocation4 + $0xa0] sm:$0xff] }
 0x540   : > { %1340 = vst.msk [vmem:[#allocation4 + $0x20] sm:$0xff] %vm1335_vm9, %v1314_v37  ;;  %1841 = vmatprep.subr.mxu1 %v3137_v42  ;;  %1771 = vmatpush1.msra.mxu0 %v1680_v61  ;;  %v1672_v45 = vld [vmem:[#allocation4 + $0x60] sm:$0xff]  ;;  %v1928_v61 = vld [vmem:[%s3809_s12] ss:$2 sm:$0xf] }
 0x541   : > { %1842 = vmatpush1.msra.mxu1 %v3131_v40  ;;  %v1418_v58 = vpop.permute.xlu0 %1417  ;;  %1772 = vmatprep.subr.mxu0 %v3356_v5  ;;  %v1668_v40 = vld [vmem:[#allocation4 + $0x40] sm:$0xff] }
 0x542   : > { %v1424_v49 = vsel %vm558_vm5, %v1416_v41, %v1418_v58  ;;  %1843 = vmatprep.subr.mxu1 %v1465_v43  ;;  %1773 = vmatpush1.msra.mxu0 %v1676_v38  ;;  %v1941_v58 = vrot.slane %v1928_v61, %v3153_v48 }
 0x543   : > { %v1318_v47 = vpop.permute.xlu1 %1317  ;;  %1844 = vmatpush1.msra.mxu1 %v1464_v23  ;;  %1774 = vmatprep.subr.mxu0 %v3387_v29 }
 0x544   : > { %1845 = vmatprep.subr.mxu1 %v3353_v2  ;;  %1775 = vmatpush1.msra.mxu0 %v1672_v45  ;;  %v2672_v45 = vld [vmem:[%s3809_s12 + $0x1] ss:$2 sm:$0xf] }
 0x545   : > { %v1316_v42 = vpop.permute.xlu0 %1315  ;;  %1846 = vmatpush1.msra.mxu1 %v3349_v62  ;;  %1776 = vmatprep.subr.mxu0 %v3308_v24  ;;  %v1660_v24 = vld [vmem:[#allocation4] sm:$0xff] }
 0x546   : > { %v1324_v5 = vsel %vm1294_vm14, %v1314_v37, %v1316_v42  ;;  %v1325_v55 = vsel %vm1294_vm14, %v1316_v42, %v1318_v47  ;;  %1847 = vmatprep.subr.mxu1 %v1424_v49  ;;  %1777 = vmatpush1.msra.mxu0 %v1668_v40  ;;  %v1972_v40 = vrot.slane %v2672_v45, %v3153_v48 }
 0x547   : > { %v1626_v56 = vpop.permute.xlu1 %1625  ;;  %1848 = vmatpush1.msra.mxu1 %v1423_v34  ;;  %1778 = vmatprep.subr.mxu0 %v1324_v5  ;;  %v1664_v29 = vld [vmem:[#allocation4 + $0x20] sm:$0xff]  ;;  %v1933_v48 = vrot.slane %v1928_v61, %v3165_v51 }
 0x548   : > { %1849 = vmatprep.subr.mxu1 %v3363_v9  ;;  %1779 = vmatpush1.msra.mxu0 %v1664_v29  ;;  %v1964_v29 = vrot.slane %v2672_v45, %v3165_v51  ;;  %v1937_v51 = vrot.slane %v1928_v61, %v3173_v52 }
 0x549   : > { %v1320_v2 = vpop.permute.xlu0 %1319  ;;  %1850 = vmatpush1.msra.mxu1 %v3359_v6  ;;  %1780 = vmatprep.subr.mxu0 %v3366_v12 }
 0x54a   : > { %v1326_v62 = vsel %vm1294_vm14, %v1318_v47, %v1320_v2  ;;  %1851 = vmatprep.subr.mxu1 %v3395_v50  ;;  %1781 = vmatpush1.msra.mxu0 %v1660_v24 }
 0x54b   : > { %v1628_v32 = vpop.permute.xlu1 %1627  ;;  %1852 = vmatpush1.msra.mxu1 %v3390_v31  ;;  %v1656_v31 = vld [vmem:[%s3804_s7] sm:$0xff] }
 0x54c   : > { %v1637_v60 = vsel %vm3813_vm10, %v1626_v56, %v1628_v32  ;;  %v1638_v9 = vsel %vm3813_vm10, %v1628_v32, %v3400_v59  ;;  %1853 = vmatprep.subr.mxu1 %v3322_v30  ;;  %v1945_v56 = vrot.slane %v1928_v61, %v3185_v57 }
 0x54d   : > { %v1632_v63 = vpop.permute.xlu0 %1631  ;;  %1854 = vmatpush1.msra.mxu1 %v3316_v27  ;;  %1810 = vmatprep.subr.mxu0 %v1638_v9  ;;  %v1659_v27 = vld [vmem:[%s3804_s7 + $0x18] sm:$0xff] }
 0x54e   : > { %v1639_v6 = vsel %vm3813_vm10, %v3400_v59, %v1632_v63  ;;  %1655 = vst.msk [vmem:[#allocation4 + $0x238] sm:$0xff] %vm3813_vm10, %v1632_v63  ;;  %1855 = vmatprep.subr.mxu1 %v1326_v62  ;;  %1811 = vmatpush2.msra.mxu0 %v1637_v60  ;;  %v1976_v62 = vrot.slane %v2672_v45, %v3185_v57 }
 0x54f   : > { %v1618_v12 = vpop.permute.xlu1 %1617  ;;  %1856 = vmatpush1.msra.mxu1 %v1325_v55  ;;  %1812 = vmatprep.subr.mxu0 %v3381_v20  ;;  %v1968_v60 = vrot.slane %v2672_v45, %v3173_v52 }
 0x550   : > { %v1634_v30 = vsel %vm3813_vm10, %v1618_v12, %v3376_v18  ;;  %1857 = vmatprep.subr.mxu1 %v3374_v16  ;;  %v1658_v16 = vld [vmem:[%s3804_s7 + $0x10] sm:$0xff] }
 0x551   : > { %v1624_v50 = vpop.permute.xlu0 %1623  ;;  %1858 = vmatpush1.msra.mxu1 %v3369_v13  ;;  %1813 = vmatpush2.msra.mxu0 %v1634_v30 }
 0x552   : > { %v1636_v20 = vsel %vm3813_vm10, %v3371_v14, %v1624_v50  ;;  %1651 = vst.msk [vmem:[#allocation4 + $0x218] sm:$0xff] %vm3813_vm10, %v1624_v50  ;;  %1815 = vmatmul.mubr.f32.vlgmr.msra.gmra.mxu0 %v1656_v31 }
 0x553   : > { %2669 = vmatprep.mubr.msk.f32.mxu0 %vm805_vm11, %v1659_v27 }
 0x555   : > { %v1731_v18 = vld [vmem:[#allocation4 + $0x238] sm:$0xff] }
 0x556   : > { %1887 = vmatprep.subr.mxu1 %v1731_v18  ;;  %1821 = vmatmul.mubr.f32.gmra.mxu0 %v1658_v16 }
 0x557   : > { %1888 = vmatpush2.msra.mxu1 %v1639_v6 }
 0x559   : > { %v1727_v59 = vld [vmem:[#allocation4 + $0x218] sm:$0xff] }
 0x55a   : > { %1889 = vmatprep.subr.mxu1 %v1727_v59 }
 0x55b   : > { %1890 = vmatpush2.msra.mxu1 %v1636_v20  ;;  %v3612_v20 = vld [vmem:[%s3807_s10] sm:$0x77] }
 0x55c   : > { %1892 = vmatmul.mubr.f32.vlgmr.msra.gmra.mxu1 %v1656_v31  ;;  %v1742_v19 = vpop.permute.xlu1 %1741 }
 0x55d   : > { %2671 = vmatprep.mubr.msk.f32.mxu1 %vm805_vm11, %v1659_v27 }
 0x55e   : > { %v1737_v13 = vpop.permute.xlu0 %1736 }
 0x560   : > { %1898 = vmatmul.mubr.f32.gmra.mxu1 %v1658_v16  ;;  %v2421_v16 = vcombine.high %v3612_v20, %v3612_v20 }
 0x562   : > { %2673 = vmatprep.mubr.msk.f32.mxu0 %vm805_vm11, %v2421_v16  ;;  %2674 = vmatprep.mubr.msk.f32.mxu1 %vm805_vm11, %v2421_v16 }
 0x612   : > { %v1816_v14 = vpop.f32.mrf.mxu0 }
 0x613   : > { %v1817_v1 = vadd.f32 %v1816_v14, %v1737_v13 }
 0x614   : > { %v1818_v3 = vpop.f32.mrf.mxu0 }
 0x615   : > { %vm1904_vm12 = vcmp.ge.f32.partialorder %v1817_v1, 0.0  ;;  %v1912_v4 = vmul.f32 0.2, %v1817_v1  ;;  %v1819_v0 = vadd.f32 %v1818_v3, %v1737_v13 }
 0x616   : > { %v1822_v21 = vpop.f32.mrf.mxu0 }
 0x617   : > { %v3474_v7 = vsel %vm1904_vm12, %v1817_v1, %v1912_v4  ;;  %vm1905_vm13 = vcmp.ge.f32.partialorder %v1819_v0, 0.0  ;;  %v1913_v8 = vmul.f32 0.2, %v1819_v0  ;;  %v1823_v10 = vadd.f32 %v1822_v21, %v1742_v19 }
 0x618   : > { %v1824_v11 = vpop.f32.mrf.mxu0  ;;  %v1950_v55 = vmul.f32 %v1933_v48, %v3474_v7  ;;  %v3537_v24 = vmul.f32 %v1964_v29, %v3474_v7 }
 0x619   : > { %v3476_v15 = vsel %vm1905_vm13, %v1819_v0, %v1913_v8  ;;  %vm1908_vm15 = vcmp.ge.f32.partialorder %v1823_v10, 0.0  ;;  %v1916_v36 = vmul.f32 0.2, %v1823_v10  ;;  %v1825_v35 = vadd.f32 %v1824_v11, %v1742_v19  ;;  %v2414_v0 = vld [vmem:[%s3808_s11] sm:$0x7] }
 0x61a   : > { %v1951_v57 = vmul.f32 %v1937_v51, %v3476_v15  ;;  %v1982_v9 = vmul.f32 %v1968_v60, %v3476_v15 }
 0x61b   : > { %v3478_v17 = vsel %vm1908_vm15, %v1823_v10, %v1916_v36  ;;  %vm1909_vm10 = vcmp.ge.f32.partialorder %v1825_v35, 0.0  ;;  %v1917_v22 = vmul.f32 0.2, %v1825_v35 }
 0x61c   : > { %v1893_v54 = vpop.f32.mrf.mxu1  ;;  %v1954_v12 = vmul.f32 %v1933_v48, %v3478_v17  ;;  %v1985_v30 = vmul.f32 %v1964_v29, %v3478_v17 }
 0x61d   : > { %v1894_v23 = vadd.f32 %v1893_v54, %v1737_v13  ;;  %v3480_v53 = vsel %vm1909_vm10, %v1825_v35, %v1917_v22 }
 0x61e   : > { %v1895_v25 = vpop.f32.mrf.mxu1  ;;  %v1955_v27 = vmul.f32 %v1937_v51, %v3480_v53  ;;  %v1986_v50 = vmul.f32 %v1968_v60, %v3480_v53 }
 0x61f   : > { %vm1906_vm12 = vcmp.ge.f32.partialorder %v1894_v23, 0.0  ;;  %v1914_v46 = vmul.f32 0.2, %v1894_v23  ;;  %v1896_v26 = vadd.f32 %v1895_v25, %v1737_v13 }
 0x620   : > { %v1899_v44 = vpop.f32.mrf.mxu1 }
 0x621   : > { %v3482_v43 = vsel %vm1906_vm12, %v1894_v23, %v1914_v46  ;;  %vm1907_vm13 = vcmp.ge.f32.partialorder %v1896_v26, 0.0  ;;  %v1915_v41 = vmul.f32 0.2, %v1896_v26  ;;  %v1900_v28 = vadd.f32 %v1899_v44, %v1742_v19 }
 0x622   : > { %v1901_v39 = vpop.f32.mrf.mxu1  ;;  %2051 = vrot.lane.b32.xlu1 %v3482_v43, %s2839_s28  ;;  %2267 = vrot.lane.b32.xlu0 %v3482_v43, %s2838_s23  ;;  %v3506_v42 = vmul.f32 %v1941_v58, %v3482_v43  ;;  %v3514_v5 = vmul.f32 %v1972_v40, %v3482_v43 }
 0x623   : > { %v3488_v33 = vsel %vm1907_vm13, %v1896_v26, %v1915_v41  ;;  %vm1910_vm10 = vcmp.ge.f32.partialorder %v1900_v28, 0.0  ;;  %v1918_v34 = vmul.f32 0.2, %v1900_v28  ;;  %v1902_v37 = vadd.f32 %v1901_v39, %v1742_v19 }
 0x624   : > { %v1953_v2 = vmul.f32 %v1945_v56, %v3488_v33  ;;  %v3544_v32 = vmul.f32 %v1976_v62, %v3488_v33 }
 0x625   : > { %v3494_v38 = vsel %vm1910_vm10, %v1900_v28, %v1918_v34  ;;  %vm1911_vm15 = vcmp.ge.f32.partialorder %v1902_v37, 0.0  ;;  %v1919_v49 = vmul.f32 0.2, %v1902_v37 }
 0x626   : > { %2269 = vrot.lane.b32.xlu0 %v3488_v33, %s2838_s23  ;;  %2263 = vrot.lane.b32.xlu1 %v3474_v7, %s2838_s23  ;;  %v1956_v63 = vmul.f32 %v1941_v58, %v3494_v38  ;;  %v1987_v52 = vmul.f32 %v1972_v40, %v3494_v38 }
 0x627   : > { %v3500_v47 = vsel %vm1911_vm15, %v1902_v37, %v1919_v49 }
 0x628   : > { %v1957_v6 = vmul.f32 %v1945_v56, %v3500_v47  ;;  %v1988_v31 = vmul.f32 %v1976_v62, %v3500_v47 }
 0x62a   : > { %2227 = vrot.lane.b32.xlu0 %v3506_v42, %s2840_s16  ;;  %2047 = vrot.lane.b32.xlu1 %v3474_v7, %s2839_s28 }
 0x62e   : > { %2187 = vrot.lane.b32.xlu0 %v3514_v5, %s2826_s26  ;;  %2139 = vrot.lane.b32.xlu1 %v3506_v42, %s2827_s27 }
 0x632   : > { %2053 = vrot.lane.b32.xlu0 %v3488_v33, %s2839_s28  ;;  %2099 = vrot.lane.b32.xlu1 %v3514_v5, %s2841_s17 }
 0x636   : > { %2049 = vrot.lane.b32.xlu0 %v3476_v15, %s2839_s28  ;;  %2265 = vrot.lane.b32.xlu1 %v3476_v15, %s2838_s23 }
 0x63a   : > { %2275 = vrot.lane.b32.xlu0 %v3494_v38, %s2838_s23  ;;  %2223 = vrot.lane.b32.xlu1 %v1950_v55, %s2840_s16 }
 0x63e   : > { %2229 = vrot.lane.b32.xlu0 %v1953_v2, %s2840_s16  ;;  %2183 = vrot.lane.b32.xlu1 %v3537_v24, %s2826_s26 }
 0x642   : > { %2189 = vrot.lane.b32.xlu0 %v3544_v32, %s2826_s26  ;;  %2135 = vrot.lane.b32.xlu1 %v1950_v55, %s2827_s27 }
 0x646   : > { %2141 = vrot.lane.b32.xlu0 %v1953_v2, %s2827_s27  ;;  %2095 = vrot.lane.b32.xlu1 %v3537_v24, %s2841_s17 }
 0x64a   : > { %2101 = vrot.lane.b32.xlu0 %v3544_v32, %s2841_s17  ;;  %2059 = vrot.lane.b32.xlu1 %v3494_v38, %s2839_s28 }
 0x64e   : > { %2137 = vrot.lane.b32.xlu0 %v1951_v57, %s2827_s27  ;;  %2271 = vrot.lane.b32.xlu1 %v3478_v17, %s2838_s23 }
 0x652   : > { %2097 = vrot.lane.b32.xlu0 %v1982_v9, %s2841_s17  ;;  %2225 = vrot.lane.b32.xlu1 %v1951_v57, %s2840_s16 }
 0x656   : > { %2277 = vrot.lane.b32.xlu0 %v3500_v47, %s2838_s23  ;;  %2185 = vrot.lane.b32.xlu1 %v1982_v9, %s2826_s26 }
 0x65a   : > { %2235 = vrot.lane.b32.xlu0 %v1956_v63, %s2840_s16  ;;  %2055 = vrot.lane.b32.xlu1 %v3478_v17, %s2839_s28 }
 0x65e   : > { %2195 = vrot.lane.b32.xlu0 %v1987_v52, %s2826_s26  ;;  %2147 = vrot.lane.b32.xlu1 %v1956_v63, %s2827_s27 }
 0x662   : > { %2061 = vrot.lane.b32.xlu0 %v3500_v47, %s2839_s28  ;;  %2107 = vrot.lane.b32.xlu1 %v1987_v52, %s2841_s17 }
 0x666   : > { %2057 = vrot.lane.b32.xlu0 %v3480_v53, %s2839_s28  ;;  %2273 = vrot.lane.b32.xlu1 %v3480_v53, %s2838_s23 }
 0x66a   : > { %2237 = vrot.lane.b32.xlu0 %v1957_v6, %s2840_s16  ;;  %2231 = vrot.lane.b32.xlu1 %v1954_v12, %s2840_s16 }
 0x66e   : > { %2197 = vrot.lane.b32.xlu0 %v1988_v31, %s2826_s26  ;;  %2191 = vrot.lane.b32.xlu1 %v1985_v30, %s2826_s26 }
 0x672   : > { %2149 = vrot.lane.b32.xlu0 %v1957_v6, %s2827_s27  ;;  %2143 = vrot.lane.b32.xlu1 %v1954_v12, %s2827_s27 }
 0x676   : > { %2109 = vrot.lane.b32.xlu0 %v1988_v31, %s2841_s17  ;;  %2103 = vrot.lane.b32.xlu1 %v1985_v30, %s2841_s17 }
 0x67a   : > { %2013 = vrot.lane.b32.xlu0 %v1957_v6, %s2842_s20  ;;  %2007 = vrot.lane.b32.xlu1 %v1954_v12, %s2842_s20 }
 0x67e   : > { %2001 = vrot.lane.b32.xlu0 %v1951_v57, %s2842_s20  ;;  %2233 = vrot.lane.b32.xlu1 %v1955_v27, %s2840_s16  ;;  %s2677_s16 = sshll.u32 %s3824_s19, 4 }
 0x682   : > { %2005 = vrot.lane.b32.xlu0 %v1953_v2, %s2842_s20  ;;  %2193 = vrot.lane.b32.xlu1 %v1986_v50, %s2826_s26 }
 0x686   : > { %2315 = vrot.lane.b32.xlu0 %v1987_v52, %s2843_s21  ;;  %2011 = vrot.lane.b32.xlu1 %v1956_v63, %s2842_s20 }
 0x68a   : > { %2145 = vrot.lane.b32.xlu0 %v1955_v27, %s2827_s27  ;;  %1999 = vrot.lane.b32.xlu1 %v1950_v55, %s2842_s20 }
 0x68e   : > { %2105 = vrot.lane.b32.xlu0 %v1986_v50, %s2841_s17  ;;  %2003 = vrot.lane.b32.xlu1 %v3506_v42, %s2842_s20 }
 0x692   : > { %2317 = vrot.lane.b32.xlu0 %v1988_v31, %s2843_s21  ;;  %2311 = vrot.lane.b32.xlu1 %v1985_v30, %s2843_s21 }
 0x694   : > { %v2052_v18 = vpop.permute.xlu1 %2051  ;;  %v2268_v59 = vpop.permute.xlu0 %2267 }
 0x696   : > { %2009 = vrot.lane.b32.xlu0 %v1955_v27, %s2842_s20  ;;  %2305 = vrot.lane.b32.xlu1 %v1982_v9, %s2843_s21 }
 0x698   : > { %v2270_v13 = vpop.permute.xlu0 %2269  ;;  %v2264_v14 = vpop.permute.xlu1 %2263 }
 0x699   : > { %v3623_v1 = vsel %vm1591_vm3, %v2268_v59, %v2270_v13  ;;  %2296 = vst.msk [vmem:[#allocation5 + $0x1d8] sm:$0xff] %vm1591_vm3, %v2270_v13 }
 0x69a   : > { %2307 = vrot.lane.b32.xlu0 %v3514_v5, %s2843_s21  ;;  %2313 = vrot.lane.b32.xlu1 %v1986_v50, %s2843_s21 }
 0x69c   : > { %v2228_v3 = vpop.permute.xlu0 %2227  ;;  %v2048_v4 = vpop.permute.xlu1 %2047 }
 0x69d   : > { %2077 = vst.msk [vmem:[#allocation5 + $0x40] sm:$0xff] %vm1384_vm4, %v2048_v4 }
 0x69e   : > { %2309 = vrot.lane.b32.xlu0 %v3544_v32, %s2843_s21  ;;  %2303 = vrot.lane.b32.xlu1 %v3537_v24, %s2843_s21  ;;  %s506_s21 = scalar_lea.vmem %s3812_s15, %s2677_s16 }
 0x6a0   : > { %v2188_v19 = vpop.permute.xlu0 %2187  ;;  %v2140_v21 = vpop.permute.xlu1 %2139  ;;  %v2401_v50 = vld [vmem:[#allocation5 + $0x1d8] sm:$0xff] }
 0x6a2   : > { %2417 = vperm.xlu1 %2771, %v2414_v0  }
 0x6a4   : > { %v2054_v8 = vpop.permute.xlu0 %2053  ;;  %v2100_v10 = vpop.permute.xlu1 %2099 }
 0x6a5   : > { %v3638_v11 = vsel %vm551_vm0, %v2052_v18, %v2054_v8 }
 0x6a8   : > { %v2050_v36 = vpop.permute.xlu0 %2049  ;;  %v2266_v35 = vpop.permute.xlu1 %2265 }
 0x6a9   : > { %v3641_v22 = vsel %vm551_vm0, %v2048_v4, %v2050_v36  ;;  %v3644_v54 = vsel %vm551_vm0, %v2050_v36, %v2052_v18  ;;  %v3647_v23 = vsel %vm1591_vm3, %v2264_v14, %v2266_v35  ;;  %v2280_v25 = vsel %vm1591_vm3, %v2266_v35, %v2268_v59 }
 0x6ac   : > { %v2276_v46 = vpop.permute.xlu0 %2275  ;;  %v2224_v26 = vpop.permute.xlu1 %2223 }
 0x6b0   : > { %v2230_v44 = vpop.permute.xlu0 %2229  ;;  %v2184_v41 = vpop.permute.xlu1 %2183 }
 0x6b1   : > { %v3651_v28 = vsel %vm1549_vm7, %v2228_v3, %v2230_v44  ;;  %2256 = vst.msk [vmem:[#allocation5 + $0x198] sm:$0xff] %vm1549_vm7, %v2230_v44 }
 0x6b4   : > { %v2190_v39 = vpop.permute.xlu0 %2189  ;;  %v2136_v34 = vpop.permute.xlu1 %2135 }
 0x6b5   : > { %v3655_v37 = vsel %vm855_vm1, %v2188_v19, %v2190_v39  ;;  %2216 = vst.msk [vmem:[#allocation5 + $0x158] sm:$0xff] %vm855_vm1, %v2190_v39 }
 0x6b6   : > { %2165 = vst.msk [vmem:[#allocation5 + $0xc0] sm:$0xff] %vm841_vm2, %v2136_v34 }
 0x6b8   : > { %v2142_v61 = vpop.permute.xlu0 %2141  ;;  %v2096_v58 = vpop.permute.xlu1 %2095 }
 0x6b9   : > { %v3660_v49 = vsel %vm544_vm6, %v2140_v21, %v2142_v61  ;;  %2125 = vst.msk [vmem:[#allocation5 + $0x80] sm:$0xff] %vm1433_vm8, %v2096_v58 }
 0x6bc   : > { %v2102_v45 = vpop.permute.xlu0 %2101  ;;  %v2060_v42 = vpop.permute.xlu1 %2059 }
 0x6bd   : > { %v3664_v40 = vsel %vm558_vm5, %v2100_v10, %v2102_v45 }
 0x6c0   : > { %v2138_v5 = vpop.permute.xlu0 %2137  ;;  %v2272_v48 = vpop.permute.xlu1 %2271 }
 0x6c1   : > { %v3667_v55 = vsel %vm544_vm6, %v2136_v34, %v2138_v5  ;;  %v3670_v56 = vsel %vm544_vm6, %v2138_v5, %v2140_v21 }
 0x6c4   : > { %v2098_v29 = vpop.permute.xlu0 %2097  ;;  %v2226_v2 = vpop.permute.xlu1 %2225 }
 0x6c5   : > { %v3673_v24 = vsel %vm558_vm5, %v2096_v58, %v2098_v29  ;;  %v3676_v62 = vsel %vm558_vm5, %v2098_v29, %v2100_v10  ;;  %v3679_v32 = vsel %vm1549_vm7, %v2224_v26, %v2226_v2  ;;  %v3682_v51 = vsel %vm1549_vm7, %v2226_v2, %v2228_v3  ;;  %v2385_v58 = vld [vmem:[#allocation5 + $0x158] sm:$0xff] }
 0x6c8   : > { %v2278_v57 = vpop.permute.xlu0 %2277  ;;  %v2186_v60 = vpop.permute.xlu1 %2185 }
 0x6c9   : > { %v2284_v9 = vsel %vm1591_vm3, %v2276_v46, %v2278_v57  ;;  %2300 = vst.msk [vmem:[#allocation5 + $0x1f8] sm:$0xff] %vm1591_vm3, %v2278_v57  ;;  %v3687_v63 = vsel %vm855_vm1, %v2184_v41, %v2186_v60  ;;  %v3690_v52 = vsel %vm855_vm1, %v2186_v60, %v2188_v19  ;;  %v2393_v41 = vld [vmem:[#allocation5 + $0x198] sm:$0xff] }
 0x6cc   : > { %v3692_v6 = vpop.permute.xlu0 %2235  ;;  %v2056_v12 = vpop.permute.xlu1 %2055 }
 0x6cd   : > { %2081 = vst.msk [vmem:[#allocation5 + $0x60] sm:$0xff] %vm1384_vm4, %v2056_v12 }
 0x6d0   : > { %v3695_v31 = vpop.permute.xlu0 %2195  ;;  %v3697_v30 = vpop.permute.xlu1 %2147  ;;  %v2405_v27 = vld [vmem:[#allocation5 + $0x1f8] sm:$0xff] }
 0x6d1   : > { %2495 = vmatprep.subr.mxu1 %v2405_v27 }
 0x6d2   : > { %2496 = vmatpush1.msra.mxu1 %v2284_v9 }
 0x6d3   : > { %2497 = vmatprep.subr.mxu1 %v2401_v50 }
 0x6d4   : > { %2498 = vmatpush1.msra.mxu1 %v3623_v1  ;;  %v2062_v16 = vpop.permute.xlu0 %2061  ;;  %v3700_v18 = vpop.permute.xlu1 %2107  ;;  %v2354_v50 = vld [vmem:[#allocation5 + $0x60] sm:$0xff] }
 0x6d5   : > { %v3703_v59 = vsel %vm551_vm0, %v2060_v42, %v2062_v16 }
 0x6d8   : > { %v2058_v13 = vpop.permute.xlu0 %2057  ;;  %v2274_v14 = vpop.permute.xlu1 %2273 }
 0x6d9   : > { %v3706_v3 = vsel %vm551_vm0, %v2056_v12, %v2058_v13  ;;  %v3709_v4 = vsel %vm551_vm0, %v2058_v13, %v2060_v42  ;;  %v2282_v0 = vsel %vm1591_vm3, %v2272_v48, %v2274_v14  ;;  %v2283_v19 = vsel %vm1591_vm3, %v2274_v14, %v2276_v46 }
 0x6da   : > { %2424 = vmatprep.subr.mxu0 %v2283_v19  ;;  %vm3815_vm0 = vcmask 777216  }
 0x6db   : > { %2425 = vmatpush1.msra.mxu0 %v2282_v0  ;;  %vm3818_vm11 = vmmov %vm3815_vm0 }
 0x6dc   : > { %v2238_v1 = vpop.permute.xlu0 %2237  ;;  %v2232_v21 = vpop.permute.xlu1 %2231  ;;  %2426 = vmatprep.subr.mxu0 %v2280_v25  ;;  %vm3822_vm3 = vmmov %vm3815_vm0 }
 0x6dd   : > { %v2244_v8 = vsel %vm1549_vm7, %v3692_v6, %v2238_v1  ;;  %2260 = vst.msk [vmem:[#allocation5 + $0x1b8] sm:$0xff] %vm1549_vm7, %v2238_v1  ;;  %2427 = vmatpush1.msra.mxu0 %v3647_v23 }
 0x6e0   : > { %v2198_v10 = vpop.permute.xlu0 %2197  ;;  %v2192_v36 = vpop.permute.xlu1 %2191 }
 0x6e1   : > { %v2204_v35 = vsel %vm855_vm1, %v3695_v31, %v2198_v10  ;;  %2220 = vst.msk [vmem:[#allocation5 + $0x178] sm:$0xff] %vm855_vm1, %v2198_v10 }
 0x6e4   : > { %v2150_v46 = vpop.permute.xlu0 %2149  ;;  %v2144_v26 = vpop.permute.xlu1 %2143  ;;  %v2397_v44 = vld [vmem:[#allocation5 + $0x1b8] sm:$0xff] }
 0x6e5   : > { %v2156_v25 = vsel %vm544_vm6, %v3697_v30, %v2150_v46  ;;  %2169 = vst.msk [vmem:[#allocation5 + $0xe0] sm:$0xff] %vm841_vm2, %v2144_v26  ;;  %2499 = vmatprep.subr.mxu1 %v2397_v44  ;;  %vm3820_vm2 = vmmov %vm3815_vm0 }
 0x6e6   : > { %2500 = vmatpush1.msra.mxu1 %v2244_v8 }
 0x6e7   : > { %2501 = vmatprep.subr.mxu1 %v2393_v41 }
 0x6e8   : > { %2502 = vmatpush1.msra.mxu1 %v3651_v28  ;;  %v2110_v23 = vpop.permute.xlu0 %2109  ;;  %v2104_v39 = vpop.permute.xlu1 %2103  ;;  %v2389_v34 = vld [vmem:[#allocation5 + $0x178] sm:$0xff] }
 0x6e9   : > { %v2116_v61 = vsel %vm558_vm5, %v3700_v18, %v2110_v23  ;;  %2129 = vst.msk [vmem:[#allocation5 + $0xa0] sm:$0xff] %vm1433_vm8, %v2104_v39  ;;  %2503 = vmatprep.subr.mxu1 %v2389_v34 }
 0x6ea   : > { %2504 = vmatpush1.msra.mxu1 %v2204_v35 }
 0x6eb   : > { %2505 = vmatprep.subr.mxu1 %v2385_v58 }
 0x6ec   : > { %2506 = vmatpush1.msra.mxu1 %v3655_v37  ;;  %v2014_v45 = vpop.permute.xlu0 %2013  ;;  %v3728_v42 = vpop.permute.xlu1 %2007 }
 0x6ed   : > { %2033 = vst.msk [vmem:[#allocation5 + $0x20] sm:$0xff] %vm1335_vm9, %v3728_v42  ;;  %2507 = vmatprep.subr.mxu1 %v3500_v47 }
 0x6ee   : > { %2508 = vmatpush1.msra.mxu1 %v3494_v38 }
 0x6ef   : > { %2509 = vmatprep.subr.mxu1 %v3488_v33 }
 0x6f0   : > { %2510 = vmatpush1.msra.mxu1 %v3482_v43  ;;  %v2002_v28 = vpop.permute.xlu0 %2001  ;;  %v2234_v5 = vpop.permute.xlu1 %2233 }
 0x6f1   : > { %v2242_v48 = vsel %vm1549_vm7, %v2232_v21, %v2234_v5  ;;  %v2243_v37 = vsel %vm1549_vm7, %v2234_v5, %v3692_v6  ;;  %2511 = vmatprep.subr.mxu1 %v2156_v25 }
 0x6f2   : > { %2428 = vmatprep.subr.mxu0 %v2243_v37 }
 0x6f3   : > { %2429 = vmatpush1.msra.mxu0 %v2242_v48 }
 0x6f4   : > { %v2006_v29 = vpop.permute.xlu0 %2005  ;;  %v2194_v2 = vpop.permute.xlu1 %2193  ;;  %2430 = vmatprep.subr.mxu0 %v3682_v51 }
 0x6f5   : > { %v2202_v38 = vsel %vm855_vm1, %v2192_v36, %v2194_v2  ;;  %v2203_v33 = vsel %vm855_vm1, %v2194_v2, %v3695_v31  ;;  %2431 = vmatpush1.msra.mxu0 %v3679_v32  ;;  %vm3819_vm1 = vmmov %vm3815_vm0 }
 0x6f6   : > { %2432 = vmatprep.subr.mxu0 %v2203_v33 }
 0x6f7   : > { %2433 = vmatpush1.msra.mxu0 %v2202_v38 }
 0x6f8   : > { %v3744_v43 = vpop.permute.xlu0 %2315  ;;  %v2012_v47 = vpop.permute.xlu1 %2011  ;;  %2434 = vmatprep.subr.mxu0 %v3690_v52 }
 0x6f9   : > { %v2020_v57 = vsel %vm1294_vm14, %v2012_v47, %v2014_v45  ;;  %2435 = vmatpush1.msra.mxu0 %v3687_v63 }
 0x6fa   : > { %2436 = vmatprep.subr.mxu0 %v3480_v53  ;;  %v2370_v53 = vld [vmem:[#allocation5 + $0xe0] sm:$0xff] }
 0x6fb   : > { %2437 = vmatpush1.msra.mxu0 %v3478_v17 }
 0x6fc   : > { %v2146_v51 = vpop.permute.xlu0 %2145  ;;  %v2000_v60 = vpop.permute.xlu1 %1999  ;;  %2438 = vmatprep.subr.mxu0 %v3476_v15  ;;  %v2366_v15 = vld [vmem:[#allocation5 + $0xc0] sm:$0xff] }
 0x6fd   : > { %v2154_v32 = vsel %vm544_vm6, %v2144_v26, %v2146_v51  ;;  %v2155_v9 = vsel %vm544_vm6, %v2146_v51, %v3697_v30  ;;  %v2015_v6 = vsel %vm1294_vm14, %v2000_v60, %v2002_v28  ;;  %2029 = vst.msk [vmem:[#allocation5] sm:$0xff] %vm1335_vm9, %v2000_v60  ;;  %2439 = vmatpush1.msra.mxu0 %v3474_v7  ;;  %vm3817_vm6 = vmmov %vm3815_vm0 }
 0x6fe   : > { %2440 = vmatprep.subr.mxu0 %v2154_v32  ;;  %2512 = vmatpush1.msra.mxu1 %v2155_v9 }
 0x6ff   : > { %2441 = vmatpush1.msra.mxu0 %v2370_v53  ;;  %2513 = vmatprep.subr.mxu1 %v3660_v49  ;;  %v2362_v49 = vld [vmem:[#allocation5 + $0xa0] sm:$0xff] }
 0x700   : > { %v2106_v17 = vpop.permute.xlu0 %2105  ;;  %v2004_v63 = vpop.permute.xlu1 %2003  ;;  %2442 = vmatprep.subr.mxu0 %v3667_v55  ;;  %2514 = vmatpush1.msra.mxu1 %v3670_v56  ;;  %v2358_v56 = vld [vmem:[#allocation5 + $0x80] sm:$0xff] }
 0x701   : > { %v2114_v52 = vsel %vm558_vm5, %v2104_v39, %v2106_v17  ;;  %v2115_v12 = vsel %vm558_vm5, %v2106_v17, %v3700_v18  ;;  %v2016_v7 = vsel %vm1294_vm14, %v2002_v28, %v2004_v63  ;;  %v2017_v31 = vsel %vm1294_vm14, %v2004_v63, %v2006_v29  ;;  %2443 = vmatpush1.msra.mxu0 %v2366_v15  ;;  %vm3816_vm5 = vmmov %vm3815_vm0 }
 0x702   : > { %2515 = vmatprep.subr.mxu1 %v2116_v61  ;;  %2444 = vmatprep.subr.mxu0 %v2114_v52 }
 0x703   : > { %2516 = vmatpush1.msra.mxu1 %v2115_v12  ;;  %2445 = vmatpush1.msra.mxu0 %v2362_v49 }
 0x704   : > { %v2318_v30 = vpop.permute.xlu0 %2317  ;;  %v2312_v55 = vpop.permute.xlu1 %2311  ;;  %2517 = vmatprep.subr.mxu1 %v3664_v40  ;;  %2446 = vmatprep.subr.mxu0 %v3673_v24  ;;  %v2350_v24 = vld [vmem:[#allocation5 + $0x40] sm:$0xff] }
 0x705   : > { %v2324_v27 = vsel %vm3815_vm0, %v3744_v43, %v2318_v30  ;;  %2340 = vst.msk [vmem:[#allocation5 + $0x238] sm:$0xff] %vm3816_vm5, %v2318_v30  ;;  %2518 = vmatpush1.msra.mxu1 %v3676_v62  ;;  %2447 = vmatpush1.msra.mxu0 %v2358_v56 }
 0x706   : > { %2519 = vmatprep.subr.mxu1 %v3703_v59  ;;  %2448 = vmatprep.subr.mxu0 %v3706_v3  ;;  %v2346_v59 = vld [vmem:[#allocation5 + $0x20] sm:$0xff] }
 0x707   : > { %2520 = vmatpush1.msra.mxu1 %v3709_v4  ;;  %2449 = vmatpush1.msra.mxu0 %v2354_v50 }
 0x708   : > { %v2010_v40 = vpop.permute.xlu0 %2009  ;;  %v2306_v16 = vpop.permute.xlu1 %2305  ;;  %2521 = vmatprep.subr.mxu1 %v3638_v11  ;;  %2450 = vmatprep.subr.mxu0 %v3641_v22  ;;  %v2342_v11 = vld [vmem:[#allocation5] sm:$0xff] }
 0x709   : > { %v2018_v18 = vsel %vm1294_vm14, %v3728_v42, %v2010_v40  ;;  %v2019_v62 = vsel %vm1294_vm14, %v2010_v40, %v2012_v47  ;;  %2522 = vmatpush1.msra.mxu1 %v3644_v54  ;;  %2451 = vmatpush1.msra.mxu0 %v2350_v24  ;;  %vm3821_vm14 = vmmov %vm3815_vm0 }
 0x70a   : > { %2523 = vmatprep.subr.mxu1 %v2020_v57  ;;  %2452 = vmatprep.subr.mxu0 %v2018_v18 }
 0x70b   : > { %2524 = vmatpush1.msra.mxu1 %v2019_v62  ;;  %2453 = vmatpush1.msra.mxu0 %v2346_v59 }
 0x70c   : > { %v2308_v13 = vpop.permute.xlu0 %2307  ;;  %v2314_v14 = vpop.permute.xlu1 %2313  ;;  %2525 = vmatprep.subr.mxu1 %v2017_v31  ;;  %2454 = vmatprep.subr.mxu0 %v2015_v6  ;;  %v2413_v22 = vld [vmem:[#allocation5 + $0x238] sm:$0xff] }
 0x70d   : > { %v2320_v3 = vsel %vm3817_vm6, %v2306_v16, %v2308_v13  ;;  %v2322_v4 = vsel %vm3818_vm11, %v2312_v55, %v2314_v14  ;;  %v2323_v0 = vsel %vm3819_vm1, %v2314_v14, %v3744_v43  ;;  %2526 = vmatpush1.msra.mxu1 %v2016_v7  ;;  %2455 = vmatpush1.msra.mxu0 %v2342_v11 }
 0x70e   : > { %2555 = vmatprep.subr.mxu1 %v2413_v22  ;;  %2484 = vmatprep.subr.mxu0 %v2323_v0 }
 0x70f   : > { %2556 = vmatpush2.msra.mxu1 %v2324_v27  ;;  %2485 = vmatpush2.msra.mxu0 %v2322_v4 }
 0x710   : > { %v2310_v54 = vpop.permute.xlu0 %2309  ;;  %v2304_v19 = vpop.permute.xlu1 %2303  ;;  %2486 = vmatprep.subr.mxu0 %v2320_v3 }
 0x711   : > { %v2321_v1 = vsel %vm3820_vm2, %v2308_v13, %v2310_v54  ;;  %2336 = vst.msk [vmem:[#allocation5 + $0x218] sm:$0xff] %vm3821_vm14, %v2310_v54  ;;  %v2319_v21 = vsel %vm3822_vm3, %v2304_v19, %v2306_v16 }
 0x712   : > { %2487 = vmatpush2.msra.mxu0 %v2319_v21 }
 0x713   : > { %2489 = vmatmul.mubr.f32.vlgmr.msra.gmra.mxu0 %v3612_v20 }
 0x718   : > { %v2409_v8 = vld [vmem:[#allocation5 + $0x218] sm:$0xff] }
 0x719   : > { %2557 = vmatprep.subr.mxu1 %v2409_v8 }
 0x71a   : > { %2558 = vmatpush2.msra.mxu1 %v2321_v1 }
 0x71b   : > { %2560 = vmatmul.mubr.f32.vlgmr.msra.gmra.mxu1 %v3612_v20 }
 0x71d   : > { %v2418_v10 = vpop.permute.xlu1 %2417 }
 0x7d3   : > { %v2490_v36 = vpop.f32.mrf.mxu0 }
 0x7d4   : > { %v2491_v35 = vadd.f32 %v2490_v36, %v2418_v10 }
 0x7d5   : > { %v2492_v46 = vpop.f32.mrf.mxu0 }
 0x7d6   : > { %v2493_v26 = vadd.f32 %v2492_v46, %v2418_v10  ;;  %2773 = vtanh.f32 %v2491_v35 }
 0x7d8   : > { %2775 = vtanh.f32 %v2493_v26 }
 0x7db   : > { %v2561_v44 = vpop.f32.mrf.mxu1 }
 0x7dc   : > { %v2562_v25 = vadd.f32 %v2561_v44, %v2418_v10 }
 0x7dd   : > { %v2563_v41 = vpop.f32.mrf.mxu1 }
 0x7de   : > { %v2564_v23 = vadd.f32 %v2563_v41, %v2418_v10  ;;  %2777 = vtanh.f32 %v2562_v25 }
 0x7e0   : > { %2779 = vtanh.f32 %v2564_v23 }
 0x7e3   : > { %v2774_v39 = vpop.eup %2773 }
 0x7e5   : > { %v2776_v34 = vpop.eup %2775 }
 0x7e6   : > { %v2574_v20 = vcombine.low %v2774_v39, %v2776_v34 }
 0x7e8   : > { %2578 = vst [vmem:[%s506_s21] sm:$0x77] %v2574_v20 }
 0x7eb   : > { %v2778_v61 = vpop.eup %2777 }
 0x7ed   : > { %v2780_v58 = vpop.eup %2779 }
 0x7ee   : > { %v2575_v45 = vcombine.low %v2778_v61, %v2780_v58 }
 0x7f0   : > { %2579 = vst [vmem:[%s506_s21 + $0x8] sm:$0x77] %v2575_v45 }
 0x7f1 PF: > { %s26_s18 = sadd.s32 1, %s2817_s18  }
 0x7f2   : > { %p23_p1 = scmp.ge.s32.totalorder %s26_s18, 4  }
 0x7f4   :  { %25 = sbr.rel (!%p23_p1) target bundleno = 1 (0x1), region = 117 }
 0x7f9   :  { %2601 = vsyncpa [#allocation7], 1 }
 0x7fa   :  { %2603 = vsyncpa [#allocation7 + $0x1], 1 }

</bundles_post_ra>
